<compile_context>
chip_gen: v6e
topology: v6e:2x2x1
jax: 0.10.0
libtpu: 0.0.40
codegen_flags: <defaults>
</compile_context>

<pallas_src>
import numpy as np
import jax
import jax.numpy as jnp
from jax.experimental import pallas as pl
from jax.experimental.pallas import tpu as pltpu

BN_EPS = 1e-5
LANES = 128  # final output padded to one full lane-dense vreg width


def gcn_graph_kernel(a_ref, x_ref, w_ref, b_ref, pa_ref, wc_ref, bc_ref, out_ref):
    """One independent block of packed graphs per grid step.

    a_ref   [1, Nb, Nb]    bf16  block-diag sym-normalized D^-1/2 (A+I) D^-1/2
    x_ref   [1, Nb, H ]    bf16  AtomEncoder node embeddings
    w_ref   [L-1, H, H]    bf16  BN-folded GCN weights for hidden layers, (in, out)
    b_ref   [L-1, 1, H]    f32   BN-folded biases for hidden layers
    pa_ref  [1, Gb, Nb]    bf16  P' = pool_mat @ A_hat  (mean-pool folded into last layer)
    wc_ref  [H, LANES]     bf16  W_comb = W_last @ W_lin^T, zero-padded to 128 lanes
    bc_ref  [1, LANES]     f32   b_comb = b_last @ W_lin^T + b_lin, zero-padded
    out_ref [1, Gb, LANES] f32   per-graph logits (first O lanes valid)
    """
    a = a_ref[0]                                      # [Nb, Nb]
    h = x_ref[0]                                      # [Nb, H]
    for l in range(w_ref.shape[0]):                   # static unroll over L-1 hidden layers
        xw = jnp.dot(h, w_ref[l], preferred_element_type=jnp.float32)          # X @ W'
        hn = jnp.dot(a, xw.astype(jnp.bfloat16),
                     preferred_element_type=jnp.float32)                        # A_hat @ (XW')
        # BN folded into W'/b'; dropout = identity (eval mode)
        h = jnp.maximum(hn + b_ref[l], 0.0).astype(jnp.bfloat16)
    # Fused last GCNConv + global_mean_pool + Linear:
    #   out = (P @ A_hat) @ h @ (W_L @ W_lin^T) + (b_L @ W_lin^T + b_lin)
    pooled = jnp.dot(pa_ref[0], h, preferred_element_type=jnp.float32)          # [Gb, H]
    out_ref[0] = jnp.dot(pooled.astype(jnp.bfloat16), wc_ref[...],
                         preferred_element_type=jnp.float32) + bc_ref[...]


def gcn_graph_forward(a_norm, embed, w_hid, b_hid, pool_a, w_comb, b_comb,
                      *, single_buffer_weights=True):
    """Full GCN_Graph forward as one pallas_call. Returns [B, Gb, LANES] f32."""
    B, Nb, _ = a_norm.shape
    Lh, H, _ = w_hid.shape
    Gb = pool_a.shape[1]
    Opad = w_comb.shape[1]

    def shared_spec(shape):
        # Grid-invariant operands: constant index_map; one buffer is enough.
        if single_buffer_weights:
            return pl.BlockSpec(shape, lambda b, _s=shape: (0,) * len(_s),
                                pipeline_mode=pl.Buffered(1))
        return pl.BlockSpec(shape, lambda b, _s=shape: (0,) * len(_s))

    return pl.pallas_call(
        gcn_graph_kernel,
        out_shape=jax.ShapeDtypeStruct((B, Gb, Opad), jnp.float32),
        grid=(B,),
        in_specs=[
            pl.BlockSpec((1, Nb, Nb), lambda b: (b, 0, 0)),   # per-block adjacency
            pl.BlockSpec((1, Nb, H), lambda b: (b, 0, 0)),    # per-block node embeddings
            shared_spec((Lh, H, H)),                          # folded hidden weights
            shared_spec((Lh, 1, H)),                          # folded hidden biases
            pl.BlockSpec((1, Gb, Nb), lambda b: (b, 0, 0)),   # per-block P' = pool @ A_hat
            shared_spec((H, Opad)),                           # W_comb (last layer + Linear)
            shared_spec((1, Opad)),                           # b_comb
        ],
        out_specs=pl.BlockSpec((1, Gb, Opad), lambda b: (b, 0, 0)),
        compiler_params=pltpu.CompilerParams(
            # independent blocks -> shardable across v7x's 2 TensorCores
            dimension_semantics=("parallel",),
        ),
        # NOTE: per-step VMEM is < 1 MiB even at Nb=256.  The adjacency buffer
        # grows as 4*Nb^2 bytes double-buffered (16 MiB at Nb=2048); before
        # reusing this kernel at Nb ~ 2048, tile A over row blocks with an
        # "arbitrary" accumulator grid axis and raise vmem_limit_bytes in
        # pltpu.CompilerParams -- v7x has only 64 MiB physical (32 MiB
        # scoped-default) VMEM vs 128 MiB on v5e/v6e.
    )(a_norm, embed, w_hid, b_hid, pool_a, w_comb, b_comb)


if __name__ == "__main__":
    key = jax.random.PRNGKey(0)

    # --- block size: fill the MXU for this chip generation ---
    try:
        kind = jax.devices()[0].device_kind.lower()
    except Exception:
        kind = ""
    # v6e/v7x: 2x256x256 MXU -> Nb=256 fills it.  v5e (and older): 128 is native.
    Nb = 256 if any(t in kind for t in ("v6", "v7", "7x")) else 128

    B = 8             # independent node blocks -> 8 pipeline steps (>= 4 per TC on v7x)
    H = 128           # hidden_dim (lane-dense)
    L = 3             # num_layers
    NG = 16           # nodes per graph
    Gb = Nb // NG     # graphs per block
    G = B * Gb        # total graphs
    O = 8             # output_dim
    F, V = 4, 10      # atom feature columns, vocab per column

    ks = jax.random.split(key, 12)

    # --- raw batched_data: integer node features ---
    x_feat = jax.random.randint(ks[0], (B, Nb, F), 0, V)

    # --- AtomEncoder: sum of per-column embedding lookups ---
    # TODO(synk): vocab-embedding gather has no clean Pallas equivalent at this
    # scale; it stays in plain JAX and hands the kernel bf16 [B, Nb, H] directly.
    emb_tables = 0.1 * jax.random.normal(ks[1], (F, V, H), jnp.float32)
    embed = jnp.zeros((B, Nb, H), jnp.float32)
    for f in range(F):
        embed = embed + emb_tables[f][x_feat[..., f]]

    # --- dense adjacency: undirected ring within each graph, + self loops, sym-norm ---
    A_np = np.zeros((B, Nb, Nb), np.float32)
    for b in range(B):
        for g in range(Gb):
            lo = g * NG
            for i in range(NG):
                u, v = lo + i, lo + (i + 1) % NG
                A_np[b, u, v] = 1.0
                A_np[b, v, u] = 1.0
    A = jnp.asarray(A_np) + jnp.eye(Nb, dtype=jnp.float32)[None]
    deg = A.sum(axis=-1)
    dinv = 1.0 / jnp.sqrt(deg)
    a_norm = A * dinv[:, :, None] * dinv[:, None, :]

    # --- GCN layer parameters (PyTorch weight is [out,in]; store W.T = (in,out)) ---
    w_stack = jnp.stack([
        ((1.0 / jnp.sqrt(H)) * jax.random.normal(k, (H, H), jnp.float32)).T
        for k in jax.random.split(ks[2], L)])             # [L, H, H]
    b_stack = jnp.zeros((L, 1, H), jnp.float32)           # GCNConv bias init = 0

    # BatchNorm1d running stats / affine for the first L-1 layers (eval mode)
    gamma = 1.0 + 0.1 * jax.random.normal(ks[3], (L - 1, 1, H), jnp.float32)
    beta = 0.1 * jax.random.normal(ks[4], (L - 1, 1, H), jnp.float32)
    mean = 0.1 * jax.random.normal(ks[5], (L - 1, 1, H), jnp.float32)
    var = jax.random.uniform(ks[6], (L - 1, 1, H), jnp.float32, 0.5, 1.5)

    # --- host-side fold: BN(eval) + GCNConv bias -> W' (column-scaled), b' ---
    s = gamma * jax.lax.rsqrt(var + BN_EPS)               # [L-1, 1, H]
    w_hid = w_stack[:L - 1] * s                            # [L-1, H, H]
    b_hid = (b_stack[:L - 1] - mean) * s + beta            # [L-1, 1, H]

    # --- global_mean_pool folded into last layer: P' = pool @ A_hat per block ---
    batch_in_block = np.repeat(np.arange(Gb), NG)          # [Nb]
    onehot = (batch_in_block[None, :] == np.arange(Gb)[:, None]).astype(np.float32)
    pool = onehot / onehot.sum(axis=1, keepdims=True)      # rows sum to 1
    pool_mat = jnp.broadcast_to(jnp.asarray(pool), (B, Gb, Nb))
    pool_a = jnp.einsum("bgn,bnm->bgm", pool_mat, a_norm)  # [B, Gb, Nb]

    # --- final Linear folded into last layer: W_comb, b_comb (zero-padded to 128) ---
    w_lin = (1.0 / jnp.sqrt(H)) * jax.random.normal(ks[7], (O, H), jnp.float32)
    b_lin = (1.0 / jnp.sqrt(H)) * jax.random.normal(ks[8], (1, O), jnp.float32)
    w_lin_t = w_lin.T                                      # [H, O]
    w_comb = w_stack[L - 1] @ w_lin_t                      # [H, O]
    b_comb = b_stack[L - 1] @ w_lin_t + b_lin              # [1, O]
    w_comb_pad = jnp.zeros((H, LANES), jnp.float32).at[:, :O].set(w_comb)
    b_comb_pad = jnp.zeros((1, LANES), jnp.float32).at[:, :O].set(b_comb)

    # --- run fused kernel: bf16 MXU inputs, f32 accumulation ---
    args = (a_norm.astype(jnp.bfloat16),
            embed.astype(jnp.bfloat16),
            w_hid.astype(jnp.bfloat16),
            b_hid.astype(jnp.float32),
            pool_a.astype(jnp.bfloat16),
            w_comb_pad.astype(jnp.bfloat16),
            b_comb_pad.astype(jnp.float32))
    try:
        out_pad = jax.block_until_ready(
            gcn_graph_forward(*args, single_buffer_weights=True))
    except Exception:
        # pl.Buffered(1) on grid-invariant operands not supported by this jax
        # build -> fall back to default double-buffering (semantics identical).
        out_pad = jax.block_until_ready(
            gcn_graph_forward(*args, single_buffer_weights=False))
    out = out_pad.reshape(G, LANES)[:, :O]

    # --- pure-JAX f32 reference of the unfolded module (eval mode) ---
    h = embed
    for l in range(L):
        xw = jnp.einsum("bnh,hk->bnk", h, w_stack[l])
        hn = jnp.einsum("bnm,bmk->bnk", a_norm, xw) + b_stack[l]
        if l < L - 1:
            hn = (hn - mean[l]) * jax.lax.rsqrt(var[l] + BN_EPS) * gamma[l] + beta[l]
            hn = jnp.maximum(hn, 0.0)
        h = hn
    pooled_ref = jnp.einsum("bgn,bnh->bgh", pool_mat, h)
    out_ref_arr = pooled_ref.reshape(G, H) @ w_lin_t + b_lin

    assert out.shape == (G, O) and out.dtype == jnp.float32
    assert bool(jnp.all(jnp.isfinite(out)))
    # bf16 MXU operands with f32 accumulation -> loose tolerance vs f32 reference
    assert bool(jnp.allclose(out, out_ref_arr, atol=2e-1, rtol=2e-1))
    print("KERNEL_OK")
</pallas_src>

<mosaic_0001>
module attributes {stable_mosaic.version = 11 : i64} {
  func.func @gcn_graph_kernel(%arg0: i32, %arg1: memref<1x128x128xbf16, #tpu.memory_space<vmem>>, %arg2: memref<1x128x128xbf16, #tpu.memory_space<vmem>>, %arg3: memref<2x128x128xbf16, #tpu.memory_space<vmem>>, %arg4: memref<2x1x128xf32, #tpu.memory_space<vmem>>, %arg5: memref<1x8x128xbf16, #tpu.memory_space<vmem>>, %arg6: memref<128x128xbf16, #tpu.memory_space<vmem>>, %arg7: memref<1x128xf32, #tpu.memory_space<vmem>>, %arg8: memref<1x8x128xf32, #tpu.memory_space<vmem>>) attributes {dimension_semantics = [#tpu.dimension_semantics<parallel>], iteration_bounds = array<i64: 8>, scalar_prefetch = 0 : i64, scratch_operands = 0 : i64, tpu.core_type = #tpu.core_type<tc>, window_params = [{transform_indices = @transform_0, window_bounds = array<i64: 1, 128, 128>}, {transform_indices = @transform_1, window_bounds = array<i64: 1, 128, 128>}, {pipeline_mode = #tpu.pipeline_mode<synchronous>, transform_indices = @transform_2, window_bounds = array<i64: 2, 128, 128>}, {pipeline_mode = #tpu.pipeline_mode<synchronous>, transform_indices = @transform_3, window_bounds = array<i64: 2, 1, 128>}, {transform_indices = @transform_4, window_bounds = array<i64: 1, 8, 128>}, {pipeline_mode = #tpu.pipeline_mode<synchronous>, transform_indices = @transform_5, window_bounds = array<i64: 128, 128>}, {pipeline_mode = #tpu.pipeline_mode<synchronous>, transform_indices = @transform_6, window_bounds = array<i64: 1, 128>}, {transform_indices = @transform_7, window_bounds = array<i64: 1, 8, 128>}]} {
    %c0 = arith.constant 0 : index
    %c0_0 = arith.constant 0 : index
    %c0_1 = arith.constant 0 : index
    %0 = vector.load %arg1[%c0, %c0_0, %c0_1] : memref<1x128x128xbf16, #tpu.memory_space<vmem>>, vector<1x128x128xbf16>
    %1 = vector.shape_cast %0 : vector<1x128x128xbf16> to vector<128x128xbf16>
    %c0_2 = arith.constant 0 : index
    %c0_3 = arith.constant 0 : index
    %c0_4 = arith.constant 0 : index
    %2 = vector.load %arg2[%c0_2, %c0_3, %c0_4] : memref<1x128x128xbf16, #tpu.memory_space<vmem>>, vector<1x128x128xbf16>
    %3 = vector.shape_cast %2 : vector<1x128x128xbf16> to vector<128x128xbf16>
    %c0_5 = arith.constant 0 : index
    %c0_6 = arith.constant 0 : index
    %c0_7 = arith.constant 0 : index
    %4 = vector.load %arg3[%c0_5, %c0_6, %c0_7] : memref<2x128x128xbf16, #tpu.memory_space<vmem>>, vector<1x128x128xbf16>
    %5 = vector.shape_cast %4 : vector<1x128x128xbf16> to vector<128x128xbf16>
    %cst = arith.constant dense<0.000000e+00> : vector<128x128xf32>
    %6 = tpu.matmul %3, %5, %cst {dimension_numbers = #tpu.dot_dimension_numbers<[1], [0], [0], [1], [0, 0, 1, 1], [], []>} : vector<128x128xbf16>, vector<128x128xbf16>, vector<128x128xf32> -> vector<128x128xf32>
    %7 = arith.truncf %6 : vector<128x128xf32> to vector<128x128xbf16>
    %cst_8 = arith.constant dense<0.000000e+00> : vector<128x128xf32>
    %8 = tpu.matmul %1, %7, %cst_8 {dimension_numbers = #tpu.dot_dimension_numbers<[1], [0], [0], [1], [0, 0, 1, 1], [], []>} : vector<128x128xbf16>, vector<128x128xbf16>, vector<128x128xf32> -> vector<128x128xf32>
    %c0_9 = arith.constant 0 : index
    %c0_10 = arith.constant 0 : index
    %c0_11 = arith.constant 0 : index
    %9 = vector.load %arg4[%c0_9, %c0_10, %c0_11] : memref<2x1x128xf32, #tpu.memory_space<vmem>>, vector<1x1x128xf32>
    %10 = vector.shape_cast %9 : vector<1x1x128xf32> to vector<1x128xf32>
    %11 = vector.broadcast %10 : vector<1x128xf32> to vector<128x128xf32>
    %12 = arith.addf %8, %11 : vector<128x128xf32>
    %cst_12 = arith.constant 0.000000e+00 : f32
    %13 = vector.broadcast %cst_12 : f32 to vector<128x128xf32>
    %14 = arith.maximumf %12, %13 : vector<128x128xf32>
    %15 = arith.truncf %14 : vector<128x128xf32> to vector<128x128xbf16>
    %c1 = arith.constant 1 : index
    %c0_13 = arith.constant 0 : index
    %c0_14 = arith.constant 0 : index
    %16 = vector.load %arg3[%c1, %c0_13, %c0_14] : memref<2x128x128xbf16, #tpu.memory_space<vmem>>, vector<1x128x128xbf16>
    %17 = vector.shape_cast %16 : vector<1x128x128xbf16> to vector<128x128xbf16>
    %cst_15 = arith.constant dense<0.000000e+00> : vector<128x128xf32>
    %18 = tpu.matmul %15, %17, %cst_15 {dimension_numbers = #tpu.dot_dimension_numbers<[1], [0], [0], [1], [0, 0, 1, 1], [], []>} : vector<128x128xbf16>, vector<128x128xbf16>, vector<128x128xf32> -> vector<128x128xf32>
    %19 = arith.truncf %18 : vector<128x128xf32> to vector<128x128xbf16>
    %cst_16 = arith.constant dense<0.000000e+00> : vector<128x128xf32>
    %20 = tpu.matmul %1, %19, %cst_16 {dimension_numbers = #tpu.dot_dimension_numbers<[1], [0], [0], [1], [0, 0, 1, 1], [], []>} : vector<128x128xbf16>, vector<128x128xbf16>, vector<128x128xf32> -> vector<128x128xf32>
    %c1_17 = arith.constant 1 : index
    %c0_18 = arith.constant 0 : index
    %c0_19 = arith.constant 0 : index
    %21 = vector.load %arg4[%c1_17, %c0_18, %c0_19] : memref<2x1x128xf32, #tpu.memory_space<vmem>>, vector<1x1x128xf32>
    %22 = vector.shape_cast %21 : vector<1x1x128xf32> to vector<1x128xf32>
    %23 = vector.broadcast %22 : vector<1x128xf32> to vector<128x128xf32>
    %24 = arith.addf %20, %23 : vector<128x128xf32>
    %cst_20 = arith.constant 0.000000e+00 : f32
    %25 = vector.broadcast %cst_20 : f32 to vector<128x128xf32>
    %26 = arith.maximumf %24, %25 : vector<128x128xf32>
    %27 = arith.truncf %26 : vector<128x128xf32> to vector<128x128xbf16>
    %c0_21 = arith.constant 0 : index
    %c0_22 = arith.constant 0 : index
    %c0_23 = arith.constant 0 : index
    %28 = vector.load %arg5[%c0_21, %c0_22, %c0_23] : memref<1x8x128xbf16, #tpu.memory_space<vmem>>, vector<1x8x128xbf16>
    %29 = vector.shape_cast %28 : vector<1x8x128xbf16> to vector<8x128xbf16>
    %cst_24 = arith.constant dense<0.000000e+00> : vector<8x128xf32>
    %30 = tpu.matmul %29, %27, %cst_24 {dimension_numbers = #tpu.dot_dimension_numbers<[1], [0], [0], [1], [0, 0, 1, 1], [], []>} : vector<8x128xbf16>, vector<128x128xbf16>, vector<8x128xf32> -> vector<8x128xf32>
    %31 = arith.truncf %30 : vector<8x128xf32> to vector<8x128xbf16>
    %c0_25 = arith.constant 0 : index
    %c0_26 = arith.constant 0 : index
    %32 = vector.load %arg6[%c0_25, %c0_26] : memref<128x128xbf16, #tpu.memory_space<vmem>>, vector<128x128xbf16>
    %cst_27 = arith.constant dense<0.000000e+00> : vector<8x128xf32>
    %33 = tpu.matmul %31, %32, %cst_27 {dimension_numbers = #tpu.dot_dimension_numbers<[1], [0], [0], [1], [0, 0, 1, 1], [], []>} : vector<8x128xbf16>, vector<128x128xbf16>, vector<8x128xf32> -> vector<8x128xf32>
    %c0_28 = arith.constant 0 : index
    %c0_29 = arith.constant 0 : index
    %34 = vector.load %arg7[%c0_28, %c0_29] : memref<1x128xf32, #tpu.memory_space<vmem>>, vector<1x128xf32>
    %35 = vector.broadcast %34 : vector<1x128xf32> to vector<8x128xf32>
    %36 = arith.addf %33, %35 : vector<8x128xf32>
    %c0_30 = arith.constant 0 : index
    %c0_31 = arith.constant 0 : index
    %c0_32 = arith.constant 0 : index
    %37 = vector.load %arg8[%c0_30, %c0_31, %c0_32] : memref<1x8x128xf32, #tpu.memory_space<vmem>>, vector<1x8x128xf32>
    %38 = vector.shape_cast %37 : vector<1x8x128xf32> to vector<8x128xf32>
    %39 = vector.shape_cast %36 : vector<8x128xf32> to vector<1x8x128xf32>
    tpu.vector_store %arg8[%c0_30, %c0_31, %c0_32], %39 {strides = array<i32>} : memref<1x8x128xf32, #tpu.memory_space<vmem>>, vector<1x8x128xf32>,
    return
  }
  func.func @transform_0(%arg0: i32) -> (i32, i32, i32) {
    %c0_i32 = arith.constant 0 : i32
    %c0_i32_0 = arith.constant 0 : i32
    %c0_i32_1 = arith.constant 0 : i32
    return %arg0, %c0_i32, %c0_i32_0 : i32, i32, i32
  }
  func.func @transform_1(%arg0: i32) -> (i32, i32, i32) {
    %c0_i32 = arith.constant 0 : i32
    %c0_i32_0 = arith.constant 0 : i32
    %c0_i32_1 = arith.constant 0 : i32
    return %arg0, %c0_i32, %c0_i32_0 : i32, i32, i32
  }
  func.func @transform_2(%arg0: i32) -> (i32, i32, i32) {
    %c0_i32 = arith.constant 0 : i32
    %c0_i32_0 = arith.constant 0 : i32
    %c0_i32_1 = arith.constant 0 : i32
    %c0_i32_2 = arith.constant 0 : i32
    return %c0_i32, %c0_i32_0, %c0_i32_1 : i32, i32, i32
  }
  func.func @transform_3(%arg0: i32) -> (i32, i32, i32) {
    %c0_i32 = arith.constant 0 : i32
    %c0_i32_0 = arith.constant 0 : i32
    %c0_i32_1 = arith.constant 0 : i32
    %c0_i32_2 = arith.constant 0 : i32
    return %c0_i32, %c0_i32_0, %c0_i32_1 : i32, i32, i32
  }
  func.func @transform_4(%arg0: i32) -> (i32, i32, i32) {
    %c0_i32 = arith.constant 0 : i32
    %c0_i32_0 = arith.constant 0 : i32
    %c0_i32_1 = arith.constant 0 : i32
    return %arg0, %c0_i32, %c0_i32_0 : i32, i32, i32
  }
  func.func @transform_5(%arg0: i32) -> (i32, i32) {
    %c0_i32 = arith.constant 0 : i32
    %c0_i32_0 = arith.constant 0 : i32
    %c0_i32_1 = arith.constant 0 : i32
    return %c0_i32, %c0_i32_0 : i32, i32
  }
  func.func @transform_6(%arg0: i32) -> (i32, i32) {
    %c0_i32 = arith.constant 0 : i32
    %c0_i32_0 = arith.constant 0 : i32
    %c0_i32_1 = arith.constant 0 : i32
    return %c0_i32, %c0_i32_0 : i32, i32
  }
  func.func @transform_7(%arg0: i32) -> (i32, i32, i32) {
    %c0_i32 = arith.constant 0 : i32
    %c0_i32_0 = arith.constant 0 : i32
    %c0_i32_1 = arith.constant 0 : i32
    return %arg0, %c0_i32, %c0_i32_0 : i32, i32, i32
  }
}

module attributes {stable_mosaic.version = 11 : i64} {
  func.func @gcn_graph_kernel(%arg0: i32, %arg1: memref<1x128x128xbf16, #tpu.memory_space<vmem>>, %arg2: memref<1x128x128xbf16, #tpu.memory_space<vmem>>, %arg3: memref<2x128x128xbf16, #tpu.memory_space<vmem>>, %arg4: memref<2x1x128xf32, #tpu.memory_space<vmem>>, %arg5: memref<1x8x128xbf16, #tpu.memory_space<vmem>>, %arg6: memref<128x128xbf16, #tpu.memory_space<vmem>>, %arg7: memref<1x128xf32, #tpu.memory_space<vmem>>, %arg8: memref<1x8x128xf32, #tpu.memory_space<vmem>>) attributes {dimension_semantics = [#tpu.dimension_semantics<parallel>], iteration_bounds = array<i64: 8>, scalar_prefetch = 0 : i64, scratch_operands = 0 : i64, tpu.core_type = #tpu.core_type<tc>, window_params = [{transform_indices = @transform_0, window_bounds = array<i64: 1, 128, 128>}, {transform_indices = @transform_1, window_bounds = array<i64: 1, 128, 128>}, {pipeline_mode = #tpu.pipeline_mode<synchronous>, transform_indices = @transform_2, window_bounds = array<i64: 2, 128, 128>}, {pipeline_mode = #tpu.pipeline_mode<synchronous>, transform_indices = @transform_3, window_bounds = array<i64: 2, 1, 128>}, {transform_indices = @transform_4, window_bounds = array<i64: 1, 8, 128>}, {pipeline_mode = #tpu.pipeline_mode<synchronous>, transform_indices = @transform_5, window_bounds = array<i64: 128, 128>}, {pipeline_mode = #tpu.pipeline_mode<synchronous>, transform_indices = @transform_6, window_bounds = array<i64: 1, 128>}, {transform_indices = @transform_7, window_bounds = array<i64: 1, 8, 128>}]} {
    %c0 = arith.constant 0 : index
    %c0_0 = arith.constant 0 : index
    %c0_1 = arith.constant 0 : index
    %0 = vector.load %arg1[%c0, %c0_0, %c0_1] : memref<1x128x128xbf16, #tpu.memory_space<vmem>>, vector<1x128x128xbf16>
    %1 = vector.shape_cast %0 : vector<1x128x128xbf16> to vector<128x128xbf16>
    %c0_2 = arith.constant 0 : index
    %c0_3 = arith.constant 0 : index
    %c0_4 = arith.constant 0 : index
    %2 = vector.load %arg2[%c0_2, %c0_3, %c0_4] : memref<1x128x128xbf16, #tpu.memory_space<vmem>>, vector<1x128x128xbf16>
    %3 = vector.shape_cast %2 : vector<1x128x128xbf16> to vector<128x128xbf16>
    %c0_5 = arith.constant 0 : index
    %c0_6 = arith.constant 0 : index
    %c0_7 = arith.constant 0 : index
    %4 = vector.load %arg3[%c0_5, %c0_6, %c0_7] : memref<2x128x128xbf16, #tpu.memory_space<vmem>>, vector<1x128x128xbf16>
    %5 = vector.shape_cast %4 : vector<1x128x128xbf16> to vector<128x128xbf16>
    %cst = arith.constant dense<0.000000e+00> : vector<128x128xf32>
    %6 = tpu.matmul %3, %5, %cst {dimension_numbers = #tpu.dot_dimension_numbers<[1], [0], [0], [1], [0, 0, 1, 1], [], []>} : vector<128x128xbf16>, vector<128x128xbf16>, vector<128x128xf32> -> vector<128x128xf32>
    %7 = arith.truncf %6 : vector<128x128xf32> to vector<128x128xbf16>
    %cst_8 = arith.constant dense<0.000000e+00> : vector<128x128xf32>
    %8 = tpu.matmul %1, %7, %cst_8 {dimension_numbers = #tpu.dot_dimension_numbers<[1], [0], [0], [1], [0, 0, 1, 1], [], []>} : vector<128x128xbf16>, vector<128x128xbf16>, vector<128x128xf32> -> vector<128x128xf32>
    %c0_9 = arith.constant 0 : index
    %c0_10 = arith.constant 0 : index
    %c0_11 = arith.constant 0 : index
    %9 = vector.load %arg4[%c0_9, %c0_10, %c0_11] : memref<2x1x128xf32, #tpu.memory_space<vmem>>, vector<1x1x128xf32>
    %10 = vector.shape_cast %9 : vector<1x1x128xf32> to vector<1x128xf32>
    %11 = vector.broadcast %10 : vector<1x128xf32> to vector<128x128xf32>
    %12 = arith.addf %8, %11 : vector<128x128xf32>
    %cst_12 = arith.constant 0.000000e+00 : f32
    %13 = vector.broadcast %cst_12 : f32 to vector<128x128xf32>
    %14 = arith.maximumf %12, %13 : vector<128x128xf32>
    %15 = arith.truncf %14 : vector<128x128xf32> to vector<128x128xbf16>
    %c1 = arith.constant 1 : index
    %c0_13 = arith.constant 0 : index
    %c0_14 = arith.constant 0 : index
    %16 = vector.load %arg3[%c1, %c0_13, %c0_14] : memref<2x128x128xbf16, #tpu.memory_space<vmem>>, vector<1x128x128xbf16>
    %17 = vector.shape_cast %16 : vector<1x128x128xbf16> to vector<128x128xbf16>
    %cst_15 = arith.constant dense<0.000000e+00> : vector<128x128xf32>
    %18 = tpu.matmul %15, %17, %cst_15 {dimension_numbers = #tpu.dot_dimension_numbers<[1], [0], [0], [1], [0, 0, 1, 1], [], []>} : vector<128x128xbf16>, vector<128x128xbf16>, vector<128x128xf32> -> vector<128x128xf32>
    %19 = arith.truncf %18 : vector<128x128xf32> to vector<128x128xbf16>
    %cst_16 = arith.constant dense<0.000000e+00> : vector<128x128xf32>
    %20 = tpu.matmul %1, %19, %cst_16 {dimension_numbers = #tpu.dot_dimension_numbers<[1], [0], [0], [1], [0, 0, 1, 1], [], []>} : vector<128x128xbf16>, vector<128x128xbf16>, vector<128x128xf32> -> vector<128x128xf32>
    %c1_17 = arith.constant 1 : index
    %c0_18 = arith.constant 0 : index
    %c0_19 = arith.constant 0 : index
    %21 = vector.load %arg4[%c1_17, %c0_18, %c0_19] : memref<2x1x128xf32, #tpu.memory_space<vmem>>, vector<1x1x128xf32>
    %22 = vector.shape_cast %21 : vector<1x1x128xf32> to vector<1x128xf32>
    %23 = vector.broadcast %22 : vector<1x128xf32> to vector<128x128xf32>
    %24 = arith.addf %20, %23 : vector<128x128xf32>
    %cst_20 = arith.constant 0.000000e+00 : f32
    %25 = vector.broadcast %cst_20 : f32 to vector<128x128xf32>
    %26 = arith.maximumf %24, %25 : vector<128x128xf32>
    %27 = arith.truncf %26 : vector<128x128xf32> to vector<128x128xbf16>
    %c0_21 = arith.constant 0 : index
    %c0_22 = arith.constant 0 : index
    %c0_23 = arith.constant 0 : index
    %28 = vector.load %arg5[%c0_21, %c0_22, %c0_23] : memref<1x8x128xbf16, #tpu.memory_space<vmem>>, vector<1x8x128xbf16>
    %29 = vector.shape_cast %28 : vector<1x8x128xbf16> to vector<8x128xbf16>
    %cst_24 = arith.constant dense<0.000000e+00> : vector<8x128xf32>
    %30 = tpu.matmul %29, %27, %cst_24 {dimension_numbers = #tpu.dot_dimension_numbers<[1], [0], [0], [1], [0, 0, 1, 1], [], []>} : vector<8x128xbf16>, vector<128x128xbf16>, vector<8x128xf32> -> vector<8x128xf32>
    %31 = arith.truncf %30 : vector<8x128xf32> to vector<8x128xbf16>
    %c0_25 = arith.constant 0 : index
    %c0_26 = arith.constant 0 : index
    %32 = vector.load %arg6[%c0_25, %c0_26] : memref<128x128xbf16, #tpu.memory_space<vmem>>, vector<128x128xbf16>
    %cst_27 = arith.constant dense<0.000000e+00> : vector<8x128xf32>
    %33 = tpu.matmul %31, %32, %cst_27 {dimension_numbers = #tpu.dot_dimension_numbers<[1], [0], [0], [1], [0, 0, 1, 1], [], []>} : vector<8x128xbf16>, vector<128x128xbf16>, vector<8x128xf32> -> vector<8x128xf32>
    %c0_28 = arith.constant 0 : index
    %c0_29 = arith.constant 0 : index
    %34 = vector.load %arg7[%c0_28, %c0_29] : memref<1x128xf32, #tpu.memory_space<vmem>>, vector<1x128xf32>
    %35 = vector.broadcast %34 : vector<1x128xf32> to vector<8x128xf32>
    %36 = arith.addf %33, %35 : vector<8x128xf32>
    %c0_30 = arith.constant 0 : index
    %c0_31 = arith.constant 0 : index
    %c0_32 = arith.constant 0 : index
    %37 = vector.load %arg8[%c0_30, %c0_31, %c0_32] : memref<1x8x128xf32, #tpu.memory_space<vmem>>, vector<1x8x128xf32>
    %38 = vector.shape_cast %37 : vector<1x8x128xf32> to vector<8x128xf32>
    %39 = vector.shape_cast %36 : vector<8x128xf32> to vector<1x8x128xf32>
    tpu.vector_store %arg8[%c0_30, %c0_31, %c0_32], %39 {strides = array<i32>} : memref<1x8x128xf32, #tpu.memory_space<vmem>>, vector<1x8x128xf32>,
    return
  }
  func.func @transform_0(%arg0: i32) -> (i32, i32, i32) {
    %c0_i32 = arith.constant 0 : i32
    %c0_i32_0 = arith.constant 0 : i32
    %c0_i32_1 = arith.constant 0 : i32
    return %arg0, %c0_i32, %c0_i32_0 : i32, i32, i32
  }
  func.func @transform_1(%arg0: i32) -> (i32, i32, i32) {
    %c0_i32 = arith.constant 0 : i32
    %c0_i32_0 = arith.constant 0 : i32
    %c0_i32_1 = arith.constant 0 : i32
    return %arg0, %c0_i32, %c0_i32_0 : i32, i32, i32
  }
  func.func @transform_2(%arg0: i32) -> (i32, i32, i32) {
    %c0_i32 = arith.constant 0 : i32
    %c0_i32_0 = arith.constant 0 : i32
    %c0_i32_1 = arith.constant 0 : i32
    %c0_i32_2 = arith.constant 0 : i32
    return %c0_i32, %c0_i32_0, %c0_i32_1 : i32, i32, i32
  }
  func.func @transform_3(%arg0: i32) -> (i32, i32, i32) {
    %c0_i32 = arith.constant 0 : i32
    %c0_i32_0 = arith.constant 0 : i32
    %c0_i32_1 = arith.constant 0 : i32
    %c0_i32_2 = arith.constant 0 : i32
    return %c0_i32, %c0_i32_0, %c0_i32_1 : i32, i32, i32
  }
  func.func @transform_4(%arg0: i32) -> (i32, i32, i32) {
    %c0_i32 = arith.constant 0 : i32
    %c0_i32_0 = arith.constant 0 : i32
    %c0_i32_1 = arith.constant 0 : i32
    return %arg0, %c0_i32, %c0_i32_0 : i32, i32, i32
  }
  func.func @transform_5(%arg0: i32) -> (i32, i32) {
    %c0_i32 = arith.constant 0 : i32
    %c0_i32_0 = arith.constant 0 : i32
    %c0_i32_1 = arith.constant 0 : i32
    return %c0_i32, %c0_i32_0 : i32, i32
  }
  func.func @transform_6(%arg0: i32) -> (i32, i32) {
    %c0_i32 = arith.constant 0 : i32
    %c0_i32_0 = arith.constant 0 : i32
    %c0_i32_1 = arith.constant 0 : i32
    return %c0_i32, %c0_i32_0 : i32, i32
  }
  func.func @transform_7(%arg0: i32) -> (i32, i32, i32) {
    %c0_i32 = arith.constant 0 : i32
    %c0_i32_0 = arith.constant 0 : i32
    %c0_i32_1 = arith.constant 0 : i32
    return %arg0, %c0_i32, %c0_i32_0 : i32, i32, i32
  }
}

</mosaic_0001>

<bundles_post_ra>
// kernel: tpu_custom_call.1
= control target key start
LH: loop header
LB: loop body
LE: loop exit
PB: predicated region body
PF: predicated region fallthrough
CT: control target
= control target key end

     0   :  { %s2502_s0 = inlined_call_operand.hbm [shape: bf16[8,128,128], index: 0, kind: input, shape index: {}]   ;;  %s2503_s1 = inlined_call_operand.hbm [shape: bf16[8,128,128], index: 1, kind: input, shape index: {}]   ;;  %s2504_s2 = inlined_call_operand.hbm [shape: bf16[2,128,128], index: 2, kind: input, shape index: {}]   ;;  %s2505_s3 = inlined_call_operand.vmem [shape: f32[2,1,128], index: 3, kind: input, shape index: {}]   ;;  %s2506_s4 = inlined_call_operand.hbm [shape: bf16[8,8,128], index: 4, kind: input, shape index: {}]   ;;  %s2507_s5 = inlined_call_operand.hbm [shape: bf16[128,128], index: 5, kind: input, shape index: {}]   ;;  %s2508_s6 = inlined_call_operand.vmem [shape: f32[1,128], index: 6, kind: input, shape index: {}]   ;;  %s2509_s7 = inlined_call_operand.hbm [shape: f32[8,8,128], index: 7, kind: output, shape index: {}]  }
   0x1   :  { %2522 = sst [smem:[#allocation22_spill]] %s2502_s0 }
   0x2   :  { %2523 = sst [smem:[#allocation23_spill]] %s2504_s2 }
   0x3   :  { %2524 = sst [smem:[#allocation24_spill]] %s2507_s5 }
   0x4   :  { %12 = vsyncpa [#allocation3], 0 }
   0x5   :  { %14 = vsyncpa [#allocation3 + $0x1], 0 }
   0x6   :  { %15 = vsyncpa [#allocation6], 0 }
   0x7   :  { %17 = vsyncpa [#allocation6 + $0x1], 0 }
   0x8   :  { %18 = vsyncpa [#allocation9], 0 }
   0x9   :  { %20 = vsyncpa [#allocation9 + $0x1], 0 }
   0xa   :  { %21 = vsyncpa [#allocation4], 0 }
   0xb   :  { %23 = vsyncpa [#allocation4 + $0x1], 0  ;;  %s2138_s24 = smov 0   ;;  %s2140_s25 = smov 0  }
   0xc   :  { %s2142_s26 = smov 0   ;;  %s2144_s27 = smov 0  }
   0xd LB: > { %2525 = sst [smem:[#allocation18_spill]] %s2082_s26  ;;  %s2159_s28 = sadd.s32 4294967295, %s2086_s27   ;;  %s2086_s27 = sphi %s2144_s27, %s2552_s27   ;;  %s2082_s26 = sphi %s2142_s26, %s2554_s26   ;;  %s2078_s25 = sphi %s2140_s25, %s2556_s25   ;;  %s2074_s24 = sphi %s2138_s24, %s2555_s24  }
   0xe   : > { %s1429_s29 = sadd.s32 4294967294, %s2086_s27   ;;  %p49_p0 = scmp.ne.s32.totalorder %s2078_s25, %s2074_s24 }
   0xf   : > { %p2514_p1 = scmp.eq.s32.totalorder %s2159_s28, 0  ;;  %p209_p2 = scmp.eq.s32.totalorder %s2159_s28, 7 }
  0x10   : > { %p215_p3 = scmp.eq.s32.totalorder %s1429_s29, 7  ;;  %p1430_p5 = scmp.ge.s32.totalorder %s2086_s27, 1 }
  0x11   : > { %p2168_p4 = por %p2514_p1, %p49_p0  ;;  %p222_p7 = scmp.lt.s32.totalorder %s2086_s27, 9 }
  0x12   : > { %p2173_p6 = por %p215_p3, %p49_p0  ;;  %s2088_s10 = smov [#allocation7]  }
  0x13   : > { %s2526_s30 = scalar_select %p2168_p4, 1, 0 }
  0x14   : > { %s2527_s8 = scalar_select %p2173_p6, 1, 0 }
  0x15   : > { %p2178_p8 = pnand %p1430_p5, %p222_p7  ;;  %s234_s11 = sshll.u32 %s2088_s10, 4  ;;  %s235_s11 = int_to_ptr.vmem [resolvable:$true] %s234_s11 }
  0x16   : > { %2528 = sst [smem:[#allocation19_spill]] %s2527_s8  ;;  %s2089_s13 = smov [#allocation10]  }
  0x17   : > { %s2529_s9 = scalar_select %p2178_p8, 1, 0 }
  0x18   : > { %p1765_p9 = pneg %p2178_p8  ;;  %s250_s14 = sshll.u32 %s2089_s13, 4  ;;  %s251_s14 = int_to_ptr.vmem [resolvable:$true] %s250_s14 }
  0x19   : > { %s1881_s15 = scalar_lea.vmem %s235_s11, 2048  ;;  %p1889_p3 = scmp.lt.s32.totalorder %s235_s11, %s235_s11 }
  0x1a   : > { %p2186_p10 = pnand %p1765_p9, %p2514_p1  ;;  %p1882_p12 = scmp.ne.s32.totalorder %s235_s11, %s1881_s15 }
  0x1b   : > { %p1890_p5 = scmp.lt.s32.totalorder %s1881_s15, %s1881_s15 }
  0x1c   : > { %p1872_p11 = pneg %p2186_p10 }
  0x1d   : > { %p1891_p7 = por %p1890_p5, %p1889_p3 }
  0x1e   : > { %p1884_p13 = pnand %p1882_p12, %p1872_p11 }
  0x20   : > { %p1885_p0 = pneg %p1884_p13 }
  0x22   : > { %p1892_p9 = pnand %p1891_p7, %p1885_p0 }
  0x24   : > { %1895 = shalt.err (!%p1892_p9)
}
  0x25   : > { %s2510_s16 = smov 64   ;;  %s2512_s17 = smov 4  }
  0x26   : > { %s2531_s2 = sld [smem:[#allocation23_spill]]  ;;  %s1907_s20 = scalar_lea.vmem %s251_s14, 1024 }
  0x27   : > { %p1908_p12 = scmp.ne.s32.totalorder %s251_s14, %s1907_s20  ;;  %p1915_p0 = scmp.lt.s32.totalorder %s251_s14, %s251_s14 }
  0x28   : > { %p1916_p5 = scmp.lt.s32.totalorder %s1907_s20, %s1907_s20 }
  0x29   : > { %p1910_p13 = pnand %p1908_p12, %p1872_p11 }
  0x2a   : > { %p1917_p7 = por %p1916_p5, %p1915_p0 }
  0x2b   : > { %p1911_p3 = pneg %p1910_p13 }
  0x2c   : > { %1768 = dma.hbm_to_vmem [thread:$0]  (!%p2186_p10), %s2531_s2, 2048, %s235_s11, [#allocation6], %s2510_s16, %s2510_s16, %s2512_s17  }
  0x2d   : > { %p1918_p9 = pnand %p1917_p7, %p1911_p3 }
  0x2f   : > { %1921 = shalt.err (!%p1918_p9)
}
  0x30   : > { %s2532_s5 = sld [smem:[#allocation24_spill]]  ;;  %s2215_s23 = sadd.s32 1, %s2086_s27  }
  0x31   : > { %2533 = sst [smem:[#allocation20_spill]] %s2215_s23  ;;  %s36_s29 = sadd.s32 1, %s2082_s26 }
  0x32   : > { %s33_s10 = ssub.s32 %s2086_s27, %s2215_s23  ;;  %p43_p11 = scmp.ne.s32.totalorder %s2082_s26, %s2078_s25 }
  0x33   : > { %p34_p12 = scmp.eq.s32.totalorder %s33_s10, 0  ;;  %p44_p13 = scmp.eq.s32.totalorder %s2086_s27, 0 }
  0x34   : > { %p2225_p3 = por %p209_p2, %p43_p11  ;;  %p1788_p0 = scmp.lt.s32.totalorder %s2086_s27, 8 }
  0x35   : > { %s2231_s12 = scalar_select %p34_p12, %s2082_s26, %s36_s29  }
  0x36   : > { %1771 = dma.hbm_to_vmem [thread:$0]  (!%p2186_p10), %s2532_s5, 1024, %s251_s14, [#allocation9], %s2510_s16, %s2510_s16, %s2512_s17  }
  0x37   : > { %s2534_s11 = scalar_select %p2225_p3, 1, 0 }
  0x38   : > { %2535 = sst [smem:[#allocation21_spill]] %s2231_s12  ;;  %p45_p5 = por %p44_p13, %p43_p11 }
  0x39   : > { %s2234_s13 = sand.u32 1, %s2082_s26   ;;  %s1497_s15 = sshll.u32 %s2086_s27, 10 }
  0x3a   : > { %s1434_s14 = sshll.u32 %s2234_s13, 6  ;;  %s2536_s0 = sld [smem:[#allocation22_spill]] }
  0x3b   : > { %s271_s21 = scalar_lea.vmem [#allocation2], %s1434_s14  ;;  %p2245_p2 = pnand %p1788_p0, %p45_p5 }
  0x3c   : > { %s278_s22 = sshll.u32 %s271_s21, 4  ;;  %s2252_s17 = scalar_lea.hbm %s2503_s1, %s1497_s15  ;;  %s2243_s22 = int_to_ptr.vmem [resolvable:$true] %s278_s22 }
  0x3d   : > { %s2254_s18 = scalar_lea.vmem [#allocation5], %s1434_s14  ;;  %p2262_p7 = pneg %p2245_p2 }
  0x40   : > { %s2241_s20 = scalar_lea.hbm %s2536_s0, %s1497_s15  ;;  %s1927_s15 = scalar_lea.hbm %s2536_s0, 8192 }
  0x41   : > { %s1922_s5 = scalar_lea.hbm %s2241_s20, 1024  ;;  %p1928_p12 = scmp.lt.s32.totalorder %s2241_s20, %s2536_s0 }
  0x42   : > { %p1923_p10 = scmp.ne.s32.totalorder %s2241_s20, %s1922_s5  ;;  %p1929_p13 = scmp.lt.s32.totalorder %s1927_s15, %s1922_s5 }
  0x44   : > { %p1925_p9 = pnand %p2262_p7, %p1923_p10  ;;  %p1930_p0 = por %p1929_p13, %p1928_p12 }
  0x46   : > { %p1926_p11 = pneg %p1925_p9 }
  0x48   : > { %p1931_p5 = pnand %p1930_p0, %p1926_p11 }
  0x4a   : > { %1934 = shalt.err (!%p1931_p5)
}
  0x4b   : > { %s1935_s19 = scalar_lea.vmem %s2243_s22, 1024  ;;  %s2092_s2 = smov [#allocation2]  }
  0x4c   : > { %p1936_p1 = scmp.ne.s32.totalorder %s2243_s22, %s1935_s19  ;;  %s1940_s16 = sshll.u32 %s2092_s2, 4  ;;  %s1941_s16 = int_to_ptr.vmem [resolvable:$false] %s1940_s16 }
  0x4d   : > { %s1942_s10 = scalar_lea.vmem %s1941_s16, 2048  ;;  %p1943_p6 = scmp.lt.s32.totalorder %s2243_s22, %s1941_s16 }
  0x4e   : > { %p1938_p10 = pnand %p1936_p1, %p2262_p7  ;;  %p1944_p3 = scmp.lt.s32.totalorder %s1942_s10, %s1935_s19 }
  0x50   : > { %p1939_p9 = pneg %p1938_p10  ;;  %p1945_p4 = por %p1944_p3, %p1943_p6 }
  0x52   : > { %p1946_p8 = pnand %p1945_p4, %p1939_p9 }
  0x54   : > { %1949 = shalt.err (!%p1946_p8)
}
  0x55   : > { %s2539_s5 = smov 4   ;;  %s2540_s12 = smov 64  }
  0x56   : > { %s2541_s15 = scalar_lea.sflag [#allocation3], %s2234_s13  ;;  %s2542_s2 = sshll.u32 %s2254_s18, 4  ;;  %s2291_s2 = int_to_ptr.vmem [resolvable:$true] %s2542_s2 }
  0x57   : > { %1775 = dma.hbm_to_vmem [thread:$0]  (!%p2245_p2), %s2241_s20, 1024, %s2243_s22, %s2541_s15, %s2540_s12, %s2540_s12, %s2539_s5  }
  0x58   : > { %s288_s19 = sand.u32 1, %s2086_s27   ;;  %s1950_s16 = scalar_lea.hbm %s2252_s17, 1024 }
  0x59   : > { %s289_s14 = scalar_lea.sflag [#allocation6], %s288_s19  ;;  %p1951_p1 = scmp.ne.s32.totalorder %s2252_s17, %s1950_s16 }
  0x5a   : > { %s1955_s26 = scalar_lea.hbm %s2503_s1, 8192  ;;  %p1956_p8 = scmp.lt.s32.totalorder %s2252_s17, %s2503_s1 }
  0x5b   : > { %p1953_p4 = pnand %p1951_p1, %p2262_p7  ;;  %p1957_p3 = scmp.lt.s32.totalorder %s1955_s26, %s1950_s16 }
  0x5d   : > { %p1954_p6 = pneg %p1953_p4  ;;  %p1958_p11 = por %p1957_p3, %p1956_p8 }
  0x5f   : > { %p1959_p12 = pnand %p1958_p11, %p1954_p6 }
  0x61   : > { %1962 = shalt.err (!%p1959_p12)
}
  0x62   : > { %s1963_s20 = scalar_lea.vmem %s2291_s2, 1024  ;;  %s2093_s22 = smov [#allocation5]  }
  0x63   : > { %p1964_p13 = scmp.ne.s32.totalorder %s2291_s2, %s1963_s20  ;;  %s1968_s0 = sshll.u32 %s2093_s22, 4  ;;  %s1969_s0 = int_to_ptr.vmem [resolvable:$false] %s1968_s0 }
  0x64   : > { %s1970_s18 = scalar_lea.vmem %s1969_s0, 2048  ;;  %p1971_p10 = scmp.lt.s32.totalorder %s2291_s2, %s1969_s0 }
  0x65   : > { %p1966_p0 = pnand %p1964_p13, %p2262_p7  ;;  %p1972_p9 = scmp.lt.s32.totalorder %s1970_s18, %s1963_s20 }
  0x67   : > { %p1967_p5 = pneg %p1966_p0  ;;  %p1973_p1 = por %p1972_p9, %p1971_p10 }
  0x69   : > { %p1974_p4 = pnand %p1973_p1, %p1967_p5 }
  0x6b   : > { %1977 = shalt.err (!%p1974_p4)
}
  0x6c   : > { %1778 = dma.hbm_to_vmem [thread:$0]  (!%p2245_p2), %s2252_s17, 1024, %s2291_s2, %s289_s14, %s2540_s12, %s2540_s12, %s2539_s5  }
  0x6d   : > { %s1440_s26 = sshll.u32 %s2234_s13, 2  ;;  %s1441_s8 = sshll.u32 %s2086_s27, 6 }
  0x6e   : > { %s2324_s16 = scalar_lea.hbm %s2506_s4, %s1441_s8  ;;  %s313_s10 = scalar_lea.vmem [#allocation8], %s1440_s26 }
  0x6f   : > { %s320_s20 = sshll.u32 %s313_s10, 4  ;;  %s310_s22 = scalar_lea.sflag [#allocation9], %s288_s19  ;;  %s321_s20 = int_to_ptr.vmem [resolvable:$true] %s320_s20 }
  0x70   : > { %s1978_s0 = scalar_lea.hbm %s2324_s16, 64  ;;  %s1983_s5 = scalar_lea.hbm %s2506_s4, 512 }
  0x71   : > { %p1979_p6 = scmp.ne.s32.totalorder %s2324_s16, %s1978_s0  ;;  %p1984_p11 = scmp.lt.s32.totalorder %s2324_s16, %s2506_s4 }
  0x72   : > { %p1985_p12 = scmp.lt.s32.totalorder %s1983_s5, %s1978_s0 }
  0x73   : > { %p1981_p8 = pnand %p1979_p6, %p2262_p7 }
  0x74   : > { %p1986_p13 = por %p1985_p12, %p1984_p11 }
  0x75   : > { %p1982_p3 = pneg %p1981_p8 }
  0x77   : > { %p1987_p0 = pnand %p1986_p13, %p1982_p3 }
  0x79   : > { %1990 = shalt.err (!%p1987_p0)
}
  0x7a   : > { %s1991_s14 = scalar_lea.vmem %s321_s20, 64  ;;  %s2094_s19 = smov [#allocation8]  }
  0x7b   : > { %p1992_p5 = scmp.ne.s32.totalorder %s321_s20, %s1991_s14  ;;  %s1996_s18 = sshll.u32 %s2094_s19, 4  ;;  %s1997_s18 = int_to_ptr.vmem [resolvable:$false] %s1996_s18 }
  0x7c   : > { %s1998_s26 = scalar_lea.vmem %s1997_s18, 128  ;;  %p1999_p1 = scmp.lt.s32.totalorder %s321_s20, %s1997_s18 }
  0x7d   : > { %p1994_p10 = pnand %p1992_p5, %p2262_p7  ;;  %p2000_p4 = scmp.lt.s32.totalorder %s1998_s26, %s1991_s14 }
  0x7f   : > { %p1995_p9 = pneg %p1994_p10  ;;  %p2001_p6 = por %p2000_p4, %p1999_p1 }
  0x81   : > { %p2002_p8 = pnand %p2001_p6, %p1995_p9 }
  0x83   : > { %2005 = shalt.err (!%p2002_p8)
}
  0x84   : > { %1781 = dma.hbm_to_vmem [thread:$0]  (!%p2245_p2), %s2324_s16, 64, %s321_s20, %s310_s22  }
  0x85   : > { %p2543_p3 = scmp.ne.s32.totalorder %s2529_s9, 0 }
  0x86   : > { %s2347_s21 = sand.u32 (!%p2543_p3), 1, %s2078_s25   ;;  %p2544_p7 = scmp.ne.s32.totalorder (!%p2543_p3), %s2526_s30, 0 }
  0x87   : > { %329 = sbr.rel (%p2543_p3) target bundleno = 1564 (0x61c), region = 48  ;;  %s1443_s8 = sshll.u32 (!%p2543_p3), %s2347_s21, 6 }
  0x88   : > { %s332_s23 = scalar_lea.sflag (!%p2543_p3), [#allocation3], %s2347_s21  ;;  %s2351_s15 = scalar_lea.vmem (!%p2543_p3), [#allocation2], %s1443_s8 }
  0x8c   : > { %2049 = dma.done.wait (%p2544_p7), %s332_s23, 1024  }
  0x8d   : > { %2051 = vsyncadd (%p2544_p7), %s332_s23, 4294966272  ;;  %s340_s29 = sand.u32 1, %s2159_s28   ;;  %s2358_s16 = scalar_lea.vmem [#allocation5], %s1443_s8 }
  0x8e   : > { %s341_s9 = scalar_lea.sflag [#allocation6], %s340_s29 }
  0x8f   : > { %2053 = dma.done.wait (%p2544_p7), %s341_s9, 1024  }
  0x90   : > { %2055 = vsyncadd (%p2544_p7), %s341_s9, 4294966272  ;;  %p2545_p2 = scmp.eq.s32.totalorder %s2159_s28, 0 }
  0x92   : > { %2057 = dma.done.wait (%p2545_p2), [#allocation6], 2048   ;;  %p2546_p11 = pmov %p2545_p2 }
  0x93   : > { %s1446_s10 = sshll.u32 %s2347_s21, 2  ;;  %s354_s20 = scalar_lea.sflag [#allocation9], %s340_s29 }
  0x94   : > { %2059 = vsyncadd (%p2546_p11), [#allocation6], 4294965248  ;;  %s2369_s22 = scalar_lea.vmem [#allocation8], %s1446_s10 }
  0x95   : > { %2061 = dma.done.wait (%p2544_p7), %s354_s20, 64  }
  0x96   : > { %2063 = vsyncadd (%p2544_p7), %s354_s20, 4294967232  ;;  %p2547_p12 = pmov %p2545_p2 }
  0x97   : > { %p2548_p13 = pmov %p2545_p2 }
  0x98   : > { %2065 = dma.done.wait (%p2547_p12), [#allocation9], 1024  }
  0x99   : > { %2067 = vsyncadd (%p2548_p13), [#allocation9], 4294966272  ;;  %v1830_v0 = vld [vmem:[#allocation7 + $0x38] sm:$0xff]   ;;  %v1831_v1 = vld [vmem:[#allocation7 + $0x30] sm:$0xff]   ;;  %vm2096_vm0 = vmmov 0   ;;  %s1448_s5 = sshll.u32 %s2347_s21, 3 }
  0x9a   : > { %1581 = vmatprep.subr.bf16.mxu0 %v1830_v0  ;;  %v1832_v2 = vld [vmem:[#allocation7 + $0x28] sm:$0xff]   ;;  %v1833_v3 = vld [vmem:[#allocation7 + $0x20] sm:$0xff]   ;;  %v1834_v5 = vld [vmem:[#allocation7 + $0x18] sm:$0xff]   ;;  %s1494_s14 = sshll.u32 %s2159_s28, 7  ;;  %s401_s19 = scalar_lea.vmem [#allocation11], %s1448_s5 }
  0x9b   : > { %1582 = vmatpush3.bf16.msra.mxu0 %v1830_v0  ;;  %v1838_v4 = vld [vmem:[%s2358_s16] sm:$0xff]   ;;  %v1835_v6 = vld [vmem:[#allocation7 + $0x10] sm:$0xff]   ;;  %v1836_v7 = vld [vmem:[#allocation7 + $0x8] sm:$0xff]   ;;  %s1295_s18 = sshll.u32 %s401_s19, 4  ;;  %s2460_s23 = scalar_lea.hbm %s2509_s7, %s1494_s14  ;;  %s2462_s18 = int_to_ptr.vmem [resolvable:$true] %s1295_s18 }
  0x9c   : > { %1583 = vmatprep.subr.bf16.mxu0 %v1831_v1  ;;  %1597 = vmatprep.mubr.bf16.mxu0 %v1838_v4  ;;  %v1837_v8 = vld [vmem:[#allocation7] sm:$0xff]   ;;  %v1839_v9 = vld [vmem:[%s2358_s16 + $0x8] sm:$0xff]   ;;  %v1840_v10 = vld [vmem:[%s2358_s16 + $0x10] sm:$0xff]   ;;  %s2006_s29 = scalar_lea.vmem %s2462_s18, 128  ;;  %p2549_p5 = scmp.ne.s32.totalorder %s2534_s11, 0 }
  0x9d   : > { %v1841_v11 = vld [vmem:[%s2358_s16 + $0x18] sm:$0xff]   ;;  %v1842_v12 = vld [vmem:[%s2358_s16 + $0x20] sm:$0xff]   ;;  %v1843_v13 = vld [vmem:[%s2358_s16 + $0x28] sm:$0xff]   ;;  %p2007_p0 = scmp.ne.s32.totalorder %s2462_s18, %s2006_s29  ;;  %s2097_s28 = smov [#allocation11]  }
  0x9e   : > { %v1844_v14 = vld [vmem:[%s2358_s16 + $0x30] sm:$0xff]   ;;  %v1845_v15 = vld [vmem:[%s2358_s16 + $0x38] sm:$0xff]   ;;  %v2388_v16 = vld [vmem:[%s2351_s15] sm:$0xff]   ;;  %s2010_s9 = sshll.u32 %s2097_s28, 4  ;;  %s2011_s9 = int_to_ptr.vmem [resolvable:$false] %s2010_s9 }
  0x9f   : > { %1584 = vmatpush3.bf16.msra.mxu0 %v1831_v1  ;;  %1629 = vmatprep.mubr.bf16.mxu1 %v2388_v16  ;;  %v1854_v17 = vld [vmem:[#allocation7 + $0x78] sm:$0xff]   ;;  %v1855_v18 = vld [vmem:[#allocation7 + $0x70] sm:$0xff]   ;;  %v1856_v19 = vld [vmem:[#allocation7 + $0x68] sm:$0xff]   ;;  %p2008_p10 = pnand %p2007_p0, %p2549_p5  ;;  %s2012_s16 = scalar_lea.vmem %s2011_s9, 256 }
  0xa0   : > { %1585 = vmatprep.subr.bf16.mxu0 %v1832_v2  ;;  %v1857_v20 = vld [vmem:[#allocation7 + $0x60] sm:$0xff]   ;;  %v1858_v21 = vld [vmem:[#allocation7 + $0x58] sm:$0xff]   ;;  %v2392_v46 = vld [vmem:[%s2351_s15 + $0x8] sm:$0xff]   ;;  %p2013_p1 = scmp.lt.s32.totalorder %s2462_s18, %s2011_s9  ;;  %p2014_p4 = scmp.lt.s32.totalorder %s2012_s16, %s2006_s29 }
  0xa1   : > { %v2395_v47 = vld [vmem:[%s2351_s15 + $0x10] sm:$0xff]   ;;  %v2400_v48 = vld [vmem:[%s2351_s15 + $0x18] sm:$0xff]   ;;  %v2403_v49 = vld [vmem:[%s2351_s15 + $0x20] sm:$0xff]   ;;  %p2009_p9 = pneg %p2008_p10 }
  0xa2   : > { %v2408_v50 = vld [vmem:[%s2351_s15 + $0x28] sm:$0xff]   ;;  %v2411_v51 = vld [vmem:[%s2351_s15 + $0x30] sm:$0xff]   ;;  %v2416_v52 = vld [vmem:[%s2351_s15 + $0x38] sm:$0xff]   ;;  %s1282_s15 = scalar_lea.sflag [#allocation4], %s2347_s21  ;;  %p2015_p6 = por %p2014_p4, %p2013_p1 }
  0xa3   : > { %1586 = vmatpush3.bf16.msra.mxu0 %v1832_v2  ;;  %v1859_v53 = vld [vmem:[#allocation7 + $0x50] sm:$0xff]   ;;  %v1860_v54 = vld [vmem:[#allocation7 + $0x48] sm:$0xff]   ;;  %v1861_v55 = vld [vmem:[#allocation7 + $0x40] sm:$0xff]  }
  0xa4   : > { %1587 = vmatprep.subr.bf16.mxu0 %v1833_v3  ;;  %v1465_v58 = vld [vmem:[%s2505_s3] ss:$0 sm:$0xff]  ;;  %p2016_p8 = pnand %p2015_p6, %p2009_p9 }
  0xa7   : > { %1588 = vmatpush3.bf16.msra.mxu0 %v1833_v3 }
  0xa8   : > { %1589 = vmatprep.subr.bf16.mxu0 %v1834_v5 }
  0xab   : > { %1590 = vmatpush3.bf16.msra.mxu0 %v1834_v5 }
  0xac   : > { %1591 = vmatprep.subr.bf16.mxu0 %v1835_v6 }
  0xaf   : > { %1592 = vmatpush3.bf16.msra.mxu0 %v1835_v6 }
  0xb0   : > { %1593 = vmatprep.subr.bf16.mxu0 %v1836_v7 }
  0xb3   : > { %1594 = vmatpush3.bf16.msra.mxu0 %v1836_v7 }
  0xb4   : > { %1595 = vmatprep.subr.bf16.mxu0 %v1837_v8 }
  0xb7   : > { %1596 = vmatpush3.bf16.msra.mxu0 %v1837_v8 }
  0xb8   : > { %1645 = vmatprep.subr.bf16.mxu0 %v1854_v17 }
  0xba   : > { %1598 = vmatmul.mubr.bf16.vlgmr.msra.gmra.mxu0 %v1839_v9 }
  0xbb   : > { %1601 = vmatprep.mubr.bf16.mxu0 %v1840_v10  ;;  %1646 = vmatpush3.bf16.msra.mxu0 %v1854_v17 }
  0xbc   : > { %1647 = vmatprep.subr.bf16.mxu0 %v1855_v18 }
  0xbf   : > { %1648 = vmatpush3.bf16.msra.mxu0 %v1855_v18 }
  0xc0   : > { %1649 = vmatprep.subr.bf16.mxu0 %v1856_v19 }
  0xc2   : > { %1602 = vmatmul.mubr.bf16.gmra.mxu0 %v1841_v11 }
  0xc3   : > { %1605 = vmatprep.mubr.bf16.mxu0 %v1842_v12  ;;  %1650 = vmatpush3.bf16.msra.mxu0 %v1856_v19 }
  0xc4   : > { %1651 = vmatprep.subr.bf16.mxu0 %v1857_v20 }
  0xc7   : > { %1652 = vmatpush3.bf16.msra.mxu0 %v1857_v20 }
  0xc8   : > { %1653 = vmatprep.subr.bf16.mxu0 %v1858_v21 }
  0xca   : > { %1606 = vmatmul.mubr.bf16.gmra.mxu0 %v1843_v13 }
  0xcb   : > { %1609 = vmatprep.mubr.bf16.mxu0 %v1844_v14  ;;  %1654 = vmatpush3.bf16.msra.mxu0 %v1858_v21 }
  0xcc   : > { %1655 = vmatprep.subr.bf16.mxu0 %v1859_v53 }
  0xcf   : > { %1656 = vmatpush3.bf16.msra.mxu0 %v1859_v53 }
  0xd0   : > { %1657 = vmatprep.subr.bf16.mxu0 %v1860_v54 }
  0xd2   : > { %1610 = vmatmul.mubr.bf16.gmra.mxu0 %v1845_v15 }
  0xd3   : > { %1658 = vmatpush3.bf16.msra.mxu0 %v1860_v54 }
  0xd4   : > { %1659 = vmatprep.subr.bf16.mxu0 %v1861_v55 }
  0xd7   : > { %1660 = vmatpush3.bf16.msra.mxu0 %v1861_v55 }
 0x17a   : > { %v1599_v22 = vpop.f32.mrf.mxu0 }
 0x17c   : > { %v581_v23 = vpop.f32.mrf.mxu0 }
 0x17e   : > { %v1600_v24 = vpop.f32.mrf.mxu0 }
 0x17f   : > { %v645_v44 = vpack.c.bf16 %v1600_v24, %v1599_v22 }
 0x180   : > { %v584_v25 = vpop.f32.mrf.mxu0 }
 0x181   : > { %v644_v45 = vpack.c.bf16 %v584_v25, %v581_v23 }
 0x182   : > { %v1603_v26 = vpop.f32.mrf.mxu0 }
 0x184   : > { %v597_v27 = vpop.f32.mrf.mxu0 }
 0x186   : > { %v1604_v28 = vpop.f32.mrf.mxu0 }
 0x187   : > { %v647_v42 = vpack.c.bf16 %v1604_v28, %v1603_v26 }
 0x188   : > { %v600_v29 = vpop.f32.mrf.mxu0 }
 0x189   : > { %v646_v43 = vpack.c.bf16 %v600_v29, %v597_v27 }
 0x18a   : > { %v1607_v30 = vpop.f32.mrf.mxu0 }
 0x18c   : > { %v613_v31 = vpop.f32.mrf.mxu0 }
 0x18e   : > { %v1608_v32 = vpop.f32.mrf.mxu0 }
 0x18f   : > { %v649_v40 = vpack.c.bf16 %v1608_v32, %v1607_v30 }
 0x190   : > { %v616_v33 = vpop.f32.mrf.mxu0 }
 0x191   : > { %v648_v41 = vpack.c.bf16 %v616_v33, %v613_v31 }
 0x192   : > { %v1611_v34 = vpop.f32.mrf.mxu0 }
 0x194   : > { %v629_v35 = vpop.f32.mrf.mxu0 }
 0x196   : > { %v1612_v36 = vpop.f32.mrf.mxu0 }
 0x197   : > { %v651_v37 = vpack.c.bf16 %v1612_v36, %v1611_v34 }
 0x198   : > { %v632_v38 = vpop.f32.mrf.mxu0 }
 0x199   : > { %v650_v39 = vpack.c.bf16 %v632_v38, %v629_v35  ;;  %1613 = vmatprep.subr.bf16.mxu1 %v651_v37 }
 0x19a   : > { %1614 = vmatpush3.bf16.msra.mxu1 %v651_v37 }
 0x19b   : > { %1615 = vmatprep.subr.bf16.mxu1 %v650_v39 }
 0x19e   : > { %1616 = vmatpush3.bf16.msra.mxu1 %v650_v39 }
 0x19f   : > { %1617 = vmatprep.subr.bf16.mxu1 %v649_v40 }
 0x1a2   : > { %1618 = vmatpush3.bf16.msra.mxu1 %v649_v40 }
 0x1a3   : > { %1619 = vmatprep.subr.bf16.mxu1 %v648_v41 }
 0x1a6   : > { %1620 = vmatpush3.bf16.msra.mxu1 %v648_v41 }
 0x1a7   : > { %1621 = vmatprep.subr.bf16.mxu1 %v647_v42 }
 0x1aa   : > { %1622 = vmatpush3.bf16.msra.mxu1 %v647_v42 }
 0x1ab   : > { %1623 = vmatprep.subr.bf16.mxu1 %v646_v43 }
 0x1ae   : > { %1624 = vmatpush3.bf16.msra.mxu1 %v646_v43 }
 0x1af   : > { %1625 = vmatprep.subr.bf16.mxu1 %v645_v44 }
 0x1b2   : > { %1626 = vmatpush3.bf16.msra.mxu1 %v645_v44 }
 0x1b3   : > { %1627 = vmatprep.subr.bf16.mxu1 %v644_v45 }
 0x1b6   : > { %1628 = vmatpush3.bf16.msra.mxu1 %v644_v45 }
 0x1b9   : > { %1630 = vmatmul.mubr.bf16.vlgmr.msra.gmra.mxu1 %v2392_v46 }
 0x1ba   : > { %1633 = vmatprep.mubr.bf16.mxu1 %v2395_v47 }
 0x1c1   : > { %1634 = vmatmul.mubr.bf16.gmra.mxu1 %v2400_v48 }
 0x1c2   : > { %1637 = vmatprep.mubr.bf16.mxu1 %v2403_v49 }
 0x1c9   : > { %1638 = vmatmul.mubr.bf16.gmra.mxu1 %v2408_v50 }
 0x1ca   : > { %1641 = vmatprep.mubr.bf16.mxu1 %v2411_v51 }
 0x1d1   : > { %1642 = vmatmul.mubr.bf16.gmra.mxu1 %v2416_v52 }
 0x1d2   : > { %1693 = vmatprep.mubr.bf16.mxu1 %v2388_v16 }
 0x279   : > { %v1631_v56 = vpop.f32.mrf.mxu1 }
 0x27a   : > { %v750_v62 = vadd.f32 %v1631_v56, %v1465_v58 }
 0x27b   : > { %v741_v57 = vpop.f32.mrf.mxu1 }
 0x27c   : > { %v742_v60 = vadd.f32 %v1465_v58, %v741_v57  ;;  %v806_v5 = vmax.f32 %v750_v62, 0.0 }
 0x27d   : > { %v1632_v59 = vpop.f32.mrf.mxu1 }
 0x27e   : > { %v753_v61 = vadd.f32 %v1632_v59, %v1465_v58  ;;  %v804_v3 = vmax.f32 %v742_v60, 0.0 }
 0x27f   : > { %v744_v63 = vpop.f32.mrf.mxu1 }
 0x280   : > { %v745_v0 = vadd.f32 %v1465_v58, %v744_v63  ;;  %v807_v1 = vmax.f32 %v753_v61, 0.0 }
 0x281   : > { %v1635_v2 = vpop.f32.mrf.mxu1 }
 0x282   : > { %v805_v4 = vmax.f32 %v745_v0, 0.0  ;;  %v821_v8 = vpack.c.bf16 %v807_v1, %v806_v5  ;;  %v766_v12 = vadd.f32 %v1635_v2, %v1465_v58 }
 0x283   : > { %v757_v6 = vpop.f32.mrf.mxu1 }
 0x284   : > { %v820_v7 = vpack.c.bf16 %v805_v4, %v804_v3  ;;  %v758_v10 = vadd.f32 %v1465_v58, %v757_v6  ;;  %v810_v19 = vmax.f32 %v766_v12, 0.0 }
 0x285   : > { %v1636_v9 = vpop.f32.mrf.mxu1 }
 0x286   : > { %v769_v11 = vadd.f32 %v1636_v9, %v1465_v58  ;;  %1661 = vmatprep.mubr.bf16.mxu0 %v820_v7  ;;  %v808_v17 = vmax.f32 %v758_v10, 0.0 }
 0x287   : > { %v760_v13 = vpop.f32.mrf.mxu1  ;;  %1662 = vmatmul.mubr.bf16.vlgmr.msra.gmra.mxu0 %v821_v8 }
 0x288   : > { %v761_v14 = vadd.f32 %v1465_v58, %v760_v13  ;;  %v811_v15 = vmax.f32 %v769_v11, 0.0 }
 0x289   : > { %v1639_v16 = vpop.f32.mrf.mxu1 }
 0x28a   : > { %v809_v18 = vmax.f32 %v761_v14, 0.0  ;;  %v823_v22 = vpack.c.bf16 %v811_v15, %v810_v19  ;;  %v782_v26 = vadd.f32 %v1639_v16, %v1465_v58  ;;  %v2095_v16 = vmov 0.0  }
 0x28b   : > { %v773_v20 = vpop.f32.mrf.mxu1  ;;  %1709 = vmatprep.subr.bf16.mxu0 %v2095_v16 }
 0x28c   : > { %v822_v21 = vpack.c.bf16 %v809_v18, %v808_v17  ;;  %v774_v24 = vadd.f32 %v1465_v58, %v773_v20  ;;  %v814_v33 = vmax.f32 %v782_v26, 0.0 }
 0x28d   : > { %v1640_v23 = vpop.f32.mrf.mxu1 }
 0x28e   : > { %v785_v25 = vadd.f32 %v1640_v23, %v1465_v58  ;;  %1665 = vmatprep.mubr.bf16.mxu0 %v822_v21  ;;  %v812_v31 = vmax.f32 %v774_v24, 0.0 }
 0x28f   : > { %v776_v27 = vpop.f32.mrf.mxu1  ;;  %1666 = vmatmul.mubr.bf16.gmra.mxu0 %v823_v22 }
 0x290   : > { %v777_v28 = vadd.f32 %v1465_v58, %v776_v27  ;;  %v815_v29 = vmax.f32 %v785_v25, 0.0 }
 0x291   : > { %v1643_v30 = vpop.f32.mrf.mxu1 }
 0x292   : > { %v813_v32 = vmax.f32 %v777_v28, 0.0  ;;  %v825_v36 = vpack.c.bf16 %v815_v29, %v814_v33  ;;  %v798_v40 = vadd.f32 %v1643_v30, %v1465_v58  ;;  %v1483_v30 = vld [vmem:[%s2505_s3 + $0x1] ss:$0 sm:$0xff] }
 0x293   : > { %v789_v34 = vpop.f32.mrf.mxu1 }
 0x294   : > { %v824_v35 = vpack.c.bf16 %v813_v32, %v812_v31  ;;  %v790_v38 = vadd.f32 %v1465_v58, %v789_v34  ;;  %v818_v53 = vmax.f32 %v798_v40, 0.0 }
 0x295   : > { %v1644_v37 = vpop.f32.mrf.mxu1 }
 0x296   : > { %v801_v39 = vadd.f32 %v1644_v37, %v1465_v58  ;;  %1669 = vmatprep.mubr.bf16.mxu0 %v824_v35  ;;  %v816_v44 = vmax.f32 %v790_v38, 0.0 }
 0x297   : > { %v792_v41 = vpop.f32.mrf.mxu1  ;;  %1670 = vmatmul.mubr.bf16.gmra.mxu0 %v825_v36 }
 0x298   : > { %v793_v42 = vadd.f32 %v1465_v58, %v792_v41  ;;  %v819_v43 = vmax.f32 %v801_v39, 0.0 }
 0x29a   : > { %v817_v45 = vmax.f32 %v793_v42, 0.0  ;;  %v827_v55 = vpack.c.bf16 %v819_v43, %v818_v53 }
 0x29c   : > { %v826_v54 = vpack.c.bf16 %v817_v45, %v816_v44 }
 0x29e   : > { %1673 = vmatprep.mubr.bf16.mxu0 %v826_v54 }
 0x29f   : > { %1674 = vmatmul.mubr.bf16.gmra.mxu0 %v827_v55 }
 0x2a0   : > { %1725 = vmatprep.mubr.msk.bf16.mxu0 %vm2096_vm0, %v2095_v16 }
 0x347   : > { %v1663_v56 = vpop.f32.mrf.mxu0 }
 0x349   : > { %v927_v57 = vpop.f32.mrf.mxu0 }
 0x34b   : > { %v1664_v59 = vpop.f32.mrf.mxu0 }
 0x34c   : > { %v991_v14 = vpack.c.bf16 %v1664_v59, %v1663_v56 }
 0x34d   : > { %v930_v60 = vpop.f32.mrf.mxu0 }
 0x34e   : > { %v990_v15 = vpack.c.bf16 %v930_v60, %v927_v57 }
 0x34f   : > { %v1667_v61 = vpop.f32.mrf.mxu0 }
 0x351   : > { %v943_v62 = vpop.f32.mrf.mxu0 }
 0x353   : > { %v1668_v63 = vpop.f32.mrf.mxu0 }
 0x354   : > { %v993_v12 = vpack.c.bf16 %v1668_v63, %v1667_v61 }
 0x355   : > { %v946_v0 = vpop.f32.mrf.mxu0 }
 0x356   : > { %v992_v13 = vpack.c.bf16 %v946_v0, %v943_v62 }
 0x357   : > { %v1671_v1 = vpop.f32.mrf.mxu0 }
 0x359   : > { %v959_v2 = vpop.f32.mrf.mxu0 }
 0x35b   : > { %v1672_v3 = vpop.f32.mrf.mxu0 }
 0x35c   : > { %v995_v10 = vpack.c.bf16 %v1672_v3, %v1671_v1 }
 0x35d   : > { %v962_v58 = vpop.f32.mrf.mxu0 }
 0x35e   : > { %v994_v11 = vpack.c.bf16 %v962_v58, %v959_v2 }
 0x35f   : > { %v1675_v4 = vpop.f32.mrf.mxu0 }
 0x361   : > { %v975_v5 = vpop.f32.mrf.mxu0 }
 0x363   : > { %v1676_v6 = vpop.f32.mrf.mxu0 }
 0x364   : > { %v997_v7 = vpack.c.bf16 %v1676_v6, %v1675_v4 }
 0x365   : > { %v978_v8 = vpop.f32.mrf.mxu0 }
 0x366   : > { %v996_v9 = vpack.c.bf16 %v978_v8, %v975_v5  ;;  %1677 = vmatprep.subr.bf16.mxu1 %v997_v7 }
 0x367   : > { %1678 = vmatpush3.bf16.msra.mxu1 %v997_v7 }
 0x368   : > { %1679 = vmatprep.subr.bf16.mxu1 %v996_v9 }
 0x36b   : > { %1680 = vmatpush3.bf16.msra.mxu1 %v996_v9 }
 0x36c   : > { %1681 = vmatprep.subr.bf16.mxu1 %v995_v10 }
 0x36f   : > { %1682 = vmatpush3.bf16.msra.mxu1 %v995_v10 }
 0x370   : > { %1683 = vmatprep.subr.bf16.mxu1 %v994_v11 }
 0x373   : > { %1684 = vmatpush3.bf16.msra.mxu1 %v994_v11 }
 0x374   : > { %1685 = vmatprep.subr.bf16.mxu1 %v993_v12 }
 0x377   : > { %1686 = vmatpush3.bf16.msra.mxu1 %v993_v12 }
 0x378   : > { %1687 = vmatprep.subr.bf16.mxu1 %v992_v13 }
 0x37b   : > { %1688 = vmatpush3.bf16.msra.mxu1 %v992_v13 }
 0x37c   : > { %1689 = vmatprep.subr.bf16.mxu1 %v991_v14 }
 0x37f   : > { %1690 = vmatpush3.bf16.msra.mxu1 %v991_v14 }
 0x380   : > { %1691 = vmatprep.subr.bf16.mxu1 %v990_v15 }
 0x383   : > { %1692 = vmatpush3.bf16.msra.mxu1 %v990_v15 }
 0x384   : > { %1729 = vmatprep.subr.bf16.mxu1 %v2095_v16 }
 0x386   : > { %1694 = vmatmul.mubr.bf16.vlgmr.msra.gmra.mxu1 %v2392_v46  ;;  %v1862_v46 = vld [vmem:[#allocation10 + $0x38] sm:$0xff]  }
 0x387   : > { %1697 = vmatprep.mubr.bf16.mxu1 %v2395_v47  ;;  %1730 = vmatpush3.bf16.msra.mxu1 %v1862_v46  ;;  %v1863_v47 = vld [vmem:[#allocation10 + $0x30] sm:$0xff]  }
 0x388   : > { %1731 = vmatprep.subr.bf16.mxu1 %v2095_v16 }
 0x38b   : > { %1732 = vmatpush3.bf16.msra.mxu1 %v1863_v47  ;;  %v1127_v47 = vld [vmem:[%s2369_s22] sm:$0xf] }
 0x38c   : > { %1733 = vmatprep.subr.bf16.mxu1 %v2095_v16 }
 0x38e   : > { %1698 = vmatmul.mubr.bf16.gmra.mxu1 %v2400_v48  ;;  %v1864_v48 = vld [vmem:[#allocation10 + $0x28] sm:$0xff]  }
 0x38f   : > { %1701 = vmatprep.mubr.bf16.mxu1 %v2403_v49  ;;  %1734 = vmatpush3.bf16.msra.mxu1 %v1864_v48  ;;  %v1865_v49 = vld [vmem:[#allocation10 + $0x20] sm:$0xff]  }
 0x390   : > { %1735 = vmatprep.subr.bf16.mxu1 %v2095_v16  ;;  %v1869_v48 = vld [vmem:[#allocation10] sm:$0xff]  }
 0x393   : > { %1736 = vmatpush3.bf16.msra.mxu1 %v1865_v49 }
 0x394   : > { %1737 = vmatprep.subr.bf16.mxu1 %v2095_v16 }
 0x396   : > { %1702 = vmatmul.mubr.bf16.gmra.mxu1 %v2408_v50  ;;  %v1866_v50 = vld [vmem:[#allocation10 + $0x18] sm:$0xff]  }
 0x397   : > { %1705 = vmatprep.mubr.bf16.mxu1 %v2411_v51  ;;  %1738 = vmatpush3.bf16.msra.mxu1 %v1866_v50  ;;  %v1867_v51 = vld [vmem:[#allocation10 + $0x10] sm:$0xff]  }
 0x398   : > { %1739 = vmatprep.subr.bf16.mxu1 %v2095_v16 }
 0x39b   : > { %1740 = vmatpush3.bf16.msra.mxu1 %v1867_v51 }
 0x39c   : > { %1741 = vmatprep.subr.bf16.mxu1 %v2095_v16 }
 0x39e   : > { %1706 = vmatmul.mubr.bf16.gmra.mxu1 %v2416_v52  ;;  %v1868_v52 = vld [vmem:[#allocation10 + $0x8] sm:$0xff]  }
 0x39f   : > { %1745 = vmatprep.mubr.msk.bf16.mxu1 %vm2096_vm0, %v2095_v16  ;;  %1742 = vmatpush3.bf16.msra.mxu1 %v1868_v52 }
 0x3a0   : > { %1743 = vmatprep.subr.bf16.mxu1 %v2095_v16 }
 0x3a3   : > { %1744 = vmatpush3.bf16.msra.mxu1 %v1869_v48 }
 0x446   : > { %v1695_v17 = vpop.f32.mrf.mxu1 }
 0x447   : > { %v1049_v6 = vadd.f32 %v1695_v17, %v1483_v30 }
 0x448   : > { %v1040_v18 = vpop.f32.mrf.mxu1 }
 0x449   : > { %v1105_v11 = vmax.f32 %v1049_v6, 0.0  ;;  %v1041_v12 = vadd.f32 %v1483_v30, %v1040_v18  ;;  %v1484_v18 = vld [vmem:[%s2508_s6] ss:$0 sm:$0xff] }
 0x44a   : > { %v1696_v19 = vpop.f32.mrf.mxu1 }
 0x44b   : > { %v1052_v58 = vadd.f32 %v1696_v19, %v1483_v30  ;;  %v1103_v15 = vmax.f32 %v1041_v12, 0.0 }
 0x44c   : > { %v1043_v20 = vpop.f32.mrf.mxu1 }
 0x44d   : > { %v1106_v8 = vmax.f32 %v1052_v58, 0.0  ;;  %v1044_v9 = vadd.f32 %v1483_v30, %v1043_v20 }
 0x44e   : > { %v1699_v21 = vpop.f32.mrf.mxu1 }
 0x44f   : > { %v1065_v61 = vadd.f32 %v1699_v21, %v1483_v30  ;;  %v1120_v13 = vpack.c.bf16 %v1106_v8, %v1105_v11  ;;  %v1104_v14 = vmax.f32 %v1044_v9, 0.0 }
 0x450   : > { %v1056_v22 = vpop.f32.mrf.mxu1 }
 0x451   : > { %v1109_v2 = vmax.f32 %v1065_v61, 0.0  ;;  %v1057_v3 = vadd.f32 %v1483_v30, %v1056_v22  ;;  %v1119_v46 = vpack.c.bf16 %v1104_v14, %v1103_v15 }
 0x452   : > { %v1700_v23 = vpop.f32.mrf.mxu1 }
 0x453   : > { %v1068_v57 = vadd.f32 %v1700_v23, %v1483_v30  ;;  %v1107_v7 = vmax.f32 %v1057_v3, 0.0 }
 0x454   : > { %v1059_v24 = vpop.f32.mrf.mxu1 }
 0x455   : > { %v1110_v63 = vmax.f32 %v1068_v57, 0.0  ;;  %v1060_v0 = vadd.f32 %v1483_v30, %v1059_v24 }
 0x456   : > { %v1703_v25 = vpop.f32.mrf.mxu1 }
 0x457   : > { %v1081_v43 = vadd.f32 %v1703_v25, %v1483_v30  ;;  %v1122_v4 = vpack.c.bf16 %v1110_v63, %v1109_v2  ;;  %v1108_v5 = vmax.f32 %v1060_v0, 0.0 }
 0x458   : > { %v1072_v26 = vpop.f32.mrf.mxu1 }
 0x459   : > { %v1113_v55 = vmax.f32 %v1081_v43, 0.0  ;;  %v1073_v56 = vadd.f32 %v1483_v30, %v1072_v26  ;;  %v1121_v10 = vpack.c.bf16 %v1108_v5, %v1107_v7 }
 0x45a   : > { %v1704_v27 = vpop.f32.mrf.mxu1 }
 0x45b   : > { %v1084_v40 = vadd.f32 %v1704_v27, %v1483_v30  ;;  %v1111_v62 = vmax.f32 %v1073_v56, 0.0 }
 0x45c   : > { %v1075_v28 = vpop.f32.mrf.mxu1 }
 0x45d   : > { %v1114_v45 = vmax.f32 %v1084_v40, 0.0  ;;  %v1076_v53 = vadd.f32 %v1483_v30, %v1075_v28 }
 0x45e   : > { %v1707_v29 = vpop.f32.mrf.mxu1 }
 0x45f   : > { %v1097_v32 = vadd.f32 %v1707_v29, %v1483_v30  ;;  %v1124_v59 = vpack.c.bf16 %v1114_v45, %v1113_v55  ;;  %v1112_v60 = vmax.f32 %v1076_v53, 0.0 }
 0x460   : > { %v1088_v31 = vpop.f32.mrf.mxu1 }
 0x461   : > { %v1117_v36 = vmax.f32 %v1097_v32, 0.0  ;;  %v1089_v37 = vadd.f32 %v1483_v30, %v1088_v31  ;;  %v1123_v1 = vpack.c.bf16 %v1112_v60, %v1111_v62 }
 0x462   : > { %v1708_v33 = vpop.f32.mrf.mxu1 }
 0x463   : > { %v1100_v34 = vadd.f32 %v1708_v33, %v1483_v30  ;;  %v1115_v44 = vmax.f32 %v1089_v37, 0.0 }
 0x464   : > { %v1091_v35 = vpop.f32.mrf.mxu1 }
 0x465   : > { %v1118_v38 = vmax.f32 %v1100_v34, 0.0  ;;  %v1092_v39 = vadd.f32 %v1483_v30, %v1091_v35 }
 0x467   : > { %v1126_v41 = vpack.c.bf16 %v1118_v38, %v1117_v36  ;;  %v1116_v42 = vmax.f32 %v1092_v39, 0.0 }
 0x469   : > { %1710 = vmatpush3.bf16.msra.mxu0 %v1126_v41  ;;  %v1125_v54 = vpack.c.bf16 %v1116_v42, %v1115_v44 }
 0x46a   : > { %1711 = vmatprep.subr.bf16.mxu0 %v2095_v16 }
 0x46d   : > { %1712 = vmatpush3.bf16.msra.mxu0 %v1125_v54 }
 0x46e   : > { %1713 = vmatprep.subr.bf16.mxu0 %v2095_v16 }
 0x471   : > { %1714 = vmatpush3.bf16.msra.mxu0 %v1124_v59 }
 0x472   : > { %1715 = vmatprep.subr.bf16.mxu0 %v2095_v16 }
 0x475   : > { %1716 = vmatpush3.bf16.msra.mxu0 %v1123_v1 }
 0x476   : > { %1717 = vmatprep.subr.bf16.mxu0 %v2095_v16 }
 0x479   : > { %1718 = vmatpush3.bf16.msra.mxu0 %v1122_v4 }
 0x47a   : > { %1719 = vmatprep.subr.bf16.mxu0 %v2095_v16 }
 0x47d   : > { %1720 = vmatpush3.bf16.msra.mxu0 %v1121_v10 }
 0x47e   : > { %1721 = vmatprep.subr.bf16.mxu0 %v2095_v16 }
 0x481   : > { %1722 = vmatpush3.bf16.msra.mxu0 %v1120_v13 }
 0x482   : > { %1723 = vmatprep.subr.bf16.mxu0 %v2095_v16 }
 0x485   : > { %1724 = vmatpush3.bf16.msra.mxu0 %v1119_v46 }
 0x488   : > { %1726 = vmatmul.mubr.bf16.vlgmr.msra.gmra.mxu0 %v1127_v47 }
 0x548   : > { %v1162_v49 = vpop.f32.mrf.mxu0 }
 0x549   : > { %v1168_v50 = vpack.c.bf16 %v1162_v49, %v1162_v49 }
 0x54a   : > { %v1727_v51 = vpop.f32.mrf.mxu0 }
 0x54b   : > { %1746 = vmatmul.mubr.bf16.vlgmr.msra.gmra.mxu1 %v1168_v50 }
 0x54c   : > { %v1165_v52 = vpop.f32.mrf.mxu0 }
 0x54e   : > { %v1728_v17 = vpop.f32.mrf.mxu0 }
 0x60b   : > { %v1274_v16 = vpop.f32.mrf.mxu1 }
 0x60c   : > { %v1275_v19 = vadd.f32 %v1484_v18, %v1274_v16 }
 0x60d   : > { %v1747_v20 = vpop.f32.mrf.mxu1 }
 0x60e   : > { %1280 = vst [vmem:[%s401_s19] sm:$0xff] %v1275_v19 }
 0x60f   : > { %v1277_v21 = vpop.f32.mrf.mxu1 }
 0x610   : > { %2019 = shalt.err (!%p2016_p8)
}
 0x611   : > { %s2020_s10 = scalar_lea.hbm %s2460_s23, 128  ;;  %s2024_s22 = scalar_lea.hbm %s2509_s7, 1024 }
 0x612   : > { %p2021_p3 = scmp.ne.s32.totalorder %s2460_s23, %s2020_s10  ;;  %p2025_p11 = scmp.lt.s32.totalorder %s2460_s23, %s2509_s7 }
 0x613   : > { %p2026_p12 = scmp.lt.s32.totalorder %s2024_s22, %s2020_s10 }
 0x614   : > { %p2022_p7 = pnand %p2021_p3, %p2549_p5 }
 0x615   : > { %p2027_p13 = por %p2026_p12, %p2025_p11 }
 0x616   : > { %p2023_p2 = pneg %p2022_p7 }
 0x618   : > { %p2028_p0 = pnand %p2027_p13, %p2023_p2 }
 0x61a   : > { %2031 = shalt.err (!%p2028_p0)
}
 0x61b   : > { %1763 = dma.vmem_to_hbm [thread:$0]  (%p2549_p5), %s2462_s18, 128, %s2460_s23, %s1282_s15   ;;  %v1748_v22 = vpop.f32.mrf.mxu1 }
 0x61c PF: > { %s2550_s17 = sld [smem:[#allocation19_spill]]  ;;  %p1791_p10 = scmp.ge.s32.totalorder %s2086_s27, 2 }
 0x61d   : > { %s1307_s13 = sand.u32 1, %s2074_s24  }
 0x61e   : > { %s1308_s5 = scalar_lea.sflag [#allocation4], %s1307_s13 }
 0x622   : > { %p2551_p9 = scmp.ne.s32.totalorder %s2550_s17, 0 }
 0x624   : > { %p1783_p1 = pnand %p1791_p10, %p2551_p9 }
 0x626   : > { %p1784_p4 = pneg %p1783_p1 }
 0x628   : > { %2069 = dma.done.wait (%p1784_p4), %s1308_s5, 128  }
 0x629   : > { %2071 = vsyncadd (%p1784_p4), %s1308_s5, 4294967168  ;;  %s2552_s27 = sld [smem:[#allocation20_spill]]  ;;  %s2555_s24 = smov %s2078_s25 }
 0x62a   : > { %s2553_s12 = sld [smem:[#allocation18_spill]] }
 0x62b   : > { %s2554_s26 = sld [smem:[#allocation21_spill]] }
 0x62f   : > { %p26_p6 = scmp.ge.s32.totalorder %s2552_s27, 10  }
 0x630   : > { %s2556_s25 = smov %s2553_s12 }
 0x631   :  { %28 = sbr.rel (!%p26_p6) target bundleno = 13 (0xd), region = 129 }
 0x636   :  { %1313 = vsyncpa [#allocation3], 1 }
 0x637   :  { %1315 = vsyncpa [#allocation3 + $0x1], 1 }
 0x638   :  { %1316 = vsyncpa [#allocation6], 1 }
 0x639   :  { %1318 = vsyncpa [#allocation6 + $0x1], 1 }
 0x63a   :  { %1319 = vsyncpa [#allocation9], 1 }
 0x63b   :  { %1321 = vsyncpa [#allocation9 + $0x1], 1 }
 0x63c   :  { %1322 = vsyncpa [#allocation4], 1 }
 0x63d   :  { %1324 = vsyncpa [#allocation4 + $0x1], 1 }

// kernel: tpu_custom_call.1
= control target key start
LH: loop header
LB: loop body
LE: loop exit
PB: predicated region body
PF: predicated region fallthrough
CT: control target
= control target key end

     0   :  { %s2502_s0 = inlined_call_operand.hbm [shape: bf16[8,128,128], index: 0, kind: input, shape index: {}]   ;;  %s2503_s1 = inlined_call_operand.hbm [shape: bf16[8,128,128], index: 1, kind: input, shape index: {}]   ;;  %s2504_s2 = inlined_call_operand.hbm [shape: bf16[2,128,128], index: 2, kind: input, shape index: {}]   ;;  %s2505_s3 = inlined_call_operand.vmem [shape: f32[2,1,128], index: 3, kind: input, shape index: {}]   ;;  %s2506_s4 = inlined_call_operand.hbm [shape: bf16[8,8,128], index: 4, kind: input, shape index: {}]   ;;  %s2507_s5 = inlined_call_operand.hbm [shape: bf16[128,128], index: 5, kind: input, shape index: {}]   ;;  %s2508_s6 = inlined_call_operand.vmem [shape: f32[1,128], index: 6, kind: input, shape index: {}]   ;;  %s2509_s7 = inlined_call_operand.hbm [shape: f32[8,8,128], index: 7, kind: output, shape index: {}]  }
   0x1   :  { %2522 = sst [smem:[#allocation22_spill]] %s2502_s0 }
   0x2   :  { %2523 = sst [smem:[#allocation23_spill]] %s2504_s2 }
   0x3   :  { %2524 = sst [smem:[#allocation24_spill]] %s2507_s5 }
   0x4   :  { %12 = vsyncpa [#allocation3], 0 }
   0x5   :  { %14 = vsyncpa [#allocation3 + $0x1], 0 }
   0x6   :  { %15 = vsyncpa [#allocation6], 0 }
   0x7   :  { %17 = vsyncpa [#allocation6 + $0x1], 0 }
   0x8   :  { %18 = vsyncpa [#allocation9], 0 }
   0x9   :  { %20 = vsyncpa [#allocation9 + $0x1], 0 }
   0xa   :  { %21 = vsyncpa [#allocation4], 0 }
   0xb   :  { %23 = vsyncpa [#allocation4 + $0x1], 0  ;;  %s2138_s24 = smov 0   ;;  %s2140_s25 = smov 0  }
   0xc   :  { %s2142_s26 = smov 0   ;;  %s2144_s27 = smov 0  }
   0xd LB: > { %2525 = sst [smem:[#allocation18_spill]] %s2082_s26  ;;  %s2159_s28 = sadd.s32 4294967295, %s2086_s27   ;;  %s2086_s27 = sphi %s2144_s27, %s2552_s27   ;;  %s2082_s26 = sphi %s2142_s26, %s2554_s26   ;;  %s2078_s25 = sphi %s2140_s25, %s2556_s25   ;;  %s2074_s24 = sphi %s2138_s24, %s2555_s24  }
   0xe   : > { %s1429_s29 = sadd.s32 4294967294, %s2086_s27   ;;  %p49_p0 = scmp.ne.s32.totalorder %s2078_s25, %s2074_s24 }
   0xf   : > { %p2514_p1 = scmp.eq.s32.totalorder %s2159_s28, 0  ;;  %p209_p2 = scmp.eq.s32.totalorder %s2159_s28, 7 }
  0x10   : > { %p215_p3 = scmp.eq.s32.totalorder %s1429_s29, 7  ;;  %p1430_p5 = scmp.ge.s32.totalorder %s2086_s27, 1 }
  0x11   : > { %p2168_p4 = por %p2514_p1, %p49_p0  ;;  %p222_p7 = scmp.lt.s32.totalorder %s2086_s27, 9 }
  0x12   : > { %p2173_p6 = por %p215_p3, %p49_p0  ;;  %s2088_s10 = smov [#allocation7]  }
  0x13   : > { %s2526_s30 = scalar_select %p2168_p4, 1, 0 }
  0x14   : > { %s2527_s8 = scalar_select %p2173_p6, 1, 0 }
  0x15   : > { %p2178_p8 = pnand %p1430_p5, %p222_p7  ;;  %s234_s11 = sshll.u32 %s2088_s10, 4  ;;  %s235_s11 = int_to_ptr.vmem [resolvable:$true] %s234_s11 }
  0x16   : > { %2528 = sst [smem:[#allocation19_spill]] %s2527_s8  ;;  %s2089_s13 = smov [#allocation10]  }
  0x17   : > { %s2529_s9 = scalar_select %p2178_p8, 1, 0 }
  0x18   : > { %p1765_p9 = pneg %p2178_p8  ;;  %s250_s14 = sshll.u32 %s2089_s13, 4  ;;  %s251_s14 = int_to_ptr.vmem [resolvable:$true] %s250_s14 }
  0x19   : > { %s1881_s15 = scalar_lea.vmem %s235_s11, 2048  ;;  %p1889_p3 = scmp.lt.s32.totalorder %s235_s11, %s235_s11 }
  0x1a   : > { %p2186_p10 = pnand %p1765_p9, %p2514_p1  ;;  %p1882_p12 = scmp.ne.s32.totalorder %s235_s11, %s1881_s15 }
  0x1b   : > { %p1890_p5 = scmp.lt.s32.totalorder %s1881_s15, %s1881_s15 }
  0x1c   : > { %p1872_p11 = pneg %p2186_p10 }
  0x1d   : > { %p1891_p7 = por %p1890_p5, %p1889_p3 }
  0x1e   : > { %p1884_p13 = pnand %p1882_p12, %p1872_p11 }
  0x20   : > { %p1885_p0 = pneg %p1884_p13 }
  0x22   : > { %p1892_p9 = pnand %p1891_p7, %p1885_p0 }
  0x24   : > { %1895 = shalt.err (!%p1892_p9)
}
  0x25   : > { %s2510_s16 = smov 64   ;;  %s2512_s17 = smov 4  }
  0x26   : > { %s2531_s2 = sld [smem:[#allocation23_spill]]  ;;  %s1907_s20 = scalar_lea.vmem %s251_s14, 1024 }
  0x27   : > { %p1908_p12 = scmp.ne.s32.totalorder %s251_s14, %s1907_s20  ;;  %p1915_p0 = scmp.lt.s32.totalorder %s251_s14, %s251_s14 }
  0x28   : > { %p1916_p5 = scmp.lt.s32.totalorder %s1907_s20, %s1907_s20 }
  0x29   : > { %p1910_p13 = pnand %p1908_p12, %p1872_p11 }
  0x2a   : > { %p1917_p7 = por %p1916_p5, %p1915_p0 }
  0x2b   : > { %p1911_p3 = pneg %p1910_p13 }
  0x2c   : > { %1768 = dma.hbm_to_vmem [thread:$0]  (!%p2186_p10), %s2531_s2, 2048, %s235_s11, [#allocation6], %s2510_s16, %s2510_s16, %s2512_s17  }
  0x2d   : > { %p1918_p9 = pnand %p1917_p7, %p1911_p3 }
  0x2f   : > { %1921 = shalt.err (!%p1918_p9)
}
  0x30   : > { %s2532_s5 = sld [smem:[#allocation24_spill]]  ;;  %s2215_s23 = sadd.s32 1, %s2086_s27  }
  0x31   : > { %2533 = sst [smem:[#allocation20_spill]] %s2215_s23  ;;  %s36_s29 = sadd.s32 1, %s2082_s26 }
  0x32   : > { %s33_s10 = ssub.s32 %s2086_s27, %s2215_s23  ;;  %p43_p11 = scmp.ne.s32.totalorder %s2082_s26, %s2078_s25 }
  0x33   : > { %p34_p12 = scmp.eq.s32.totalorder %s33_s10, 0  ;;  %p44_p13 = scmp.eq.s32.totalorder %s2086_s27, 0 }
  0x34   : > { %p2225_p3 = por %p209_p2, %p43_p11  ;;  %p1788_p0 = scmp.lt.s32.totalorder %s2086_s27, 8 }
  0x35   : > { %s2231_s12 = scalar_select %p34_p12, %s2082_s26, %s36_s29  }
  0x36   : > { %1771 = dma.hbm_to_vmem [thread:$0]  (!%p2186_p10), %s2532_s5, 1024, %s251_s14, [#allocation9], %s2510_s16, %s2510_s16, %s2512_s17  }
  0x37   : > { %s2534_s11 = scalar_select %p2225_p3, 1, 0 }
  0x38   : > { %2535 = sst [smem:[#allocation21_spill]] %s2231_s12  ;;  %p45_p5 = por %p44_p13, %p43_p11 }
  0x39   : > { %s2234_s13 = sand.u32 1, %s2082_s26   ;;  %s1497_s15 = sshll.u32 %s2086_s27, 10 }
  0x3a   : > { %s1434_s14 = sshll.u32 %s2234_s13, 6  ;;  %s2536_s0 = sld [smem:[#allocation22_spill]] }
  0x3b   : > { %s271_s21 = scalar_lea.vmem [#allocation2], %s1434_s14  ;;  %p2245_p2 = pnand %p1788_p0, %p45_p5 }
  0x3c   : > { %s278_s22 = sshll.u32 %s271_s21, 4  ;;  %s2252_s17 = scalar_lea.hbm %s2503_s1, %s1497_s15  ;;  %s2243_s22 = int_to_ptr.vmem [resolvable:$true] %s278_s22 }
  0x3d   : > { %s2254_s18 = scalar_lea.vmem [#allocation5], %s1434_s14  ;;  %p2262_p7 = pneg %p2245_p2 }
  0x40   : > { %s2241_s20 = scalar_lea.hbm %s2536_s0, %s1497_s15  ;;  %s1927_s15 = scalar_lea.hbm %s2536_s0, 8192 }
  0x41   : > { %s1922_s5 = scalar_lea.hbm %s2241_s20, 1024  ;;  %p1928_p12 = scmp.lt.s32.totalorder %s2241_s20, %s2536_s0 }
  0x42   : > { %p1923_p10 = scmp.ne.s32.totalorder %s2241_s20, %s1922_s5  ;;  %p1929_p13 = scmp.lt.s32.totalorder %s1927_s15, %s1922_s5 }
  0x44   : > { %p1925_p9 = pnand %p2262_p7, %p1923_p10  ;;  %p1930_p0 = por %p1929_p13, %p1928_p12 }
  0x46   : > { %p1926_p11 = pneg %p1925_p9 }
  0x48   : > { %p1931_p5 = pnand %p1930_p0, %p1926_p11 }
  0x4a   : > { %1934 = shalt.err (!%p1931_p5)
}
  0x4b   : > { %s1935_s19 = scalar_lea.vmem %s2243_s22, 1024  ;;  %s2092_s2 = smov [#allocation2]  }
  0x4c   : > { %p1936_p1 = scmp.ne.s32.totalorder %s2243_s22, %s1935_s19  ;;  %s1940_s16 = sshll.u32 %s2092_s2, 4  ;;  %s1941_s16 = int_to_ptr.vmem [resolvable:$false] %s1940_s16 }
  0x4d   : > { %s1942_s10 = scalar_lea.vmem %s1941_s16, 2048  ;;  %p1943_p6 = scmp.lt.s32.totalorder %s2243_s22, %s1941_s16 }
  0x4e   : > { %p1938_p10 = pnand %p1936_p1, %p2262_p7  ;;  %p1944_p3 = scmp.lt.s32.totalorder %s1942_s10, %s1935_s19 }
  0x50   : > { %p1939_p9 = pneg %p1938_p10  ;;  %p1945_p4 = por %p1944_p3, %p1943_p6 }
  0x52   : > { %p1946_p8 = pnand %p1945_p4, %p1939_p9 }
  0x54   : > { %1949 = shalt.err (!%p1946_p8)
}
  0x55   : > { %s2539_s5 = smov 4   ;;  %s2540_s12 = smov 64  }
  0x56   : > { %s2541_s15 = scalar_lea.sflag [#allocation3], %s2234_s13  ;;  %s2542_s2 = sshll.u32 %s2254_s18, 4  ;;  %s2291_s2 = int_to_ptr.vmem [resolvable:$true] %s2542_s2 }
  0x57   : > { %1775 = dma.hbm_to_vmem [thread:$0]  (!%p2245_p2), %s2241_s20, 1024, %s2243_s22, %s2541_s15, %s2540_s12, %s2540_s12, %s2539_s5  }
  0x58   : > { %s288_s19 = sand.u32 1, %s2086_s27   ;;  %s1950_s16 = scalar_lea.hbm %s2252_s17, 1024 }
  0x59   : > { %s289_s14 = scalar_lea.sflag [#allocation6], %s288_s19  ;;  %p1951_p1 = scmp.ne.s32.totalorder %s2252_s17, %s1950_s16 }
  0x5a   : > { %s1955_s26 = scalar_lea.hbm %s2503_s1, 8192  ;;  %p1956_p8 = scmp.lt.s32.totalorder %s2252_s17, %s2503_s1 }
  0x5b   : > { %p1953_p4 = pnand %p1951_p1, %p2262_p7  ;;  %p1957_p3 = scmp.lt.s32.totalorder %s1955_s26, %s1950_s16 }
  0x5d   : > { %p1954_p6 = pneg %p1953_p4  ;;  %p1958_p11 = por %p1957_p3, %p1956_p8 }
  0x5f   : > { %p1959_p12 = pnand %p1958_p11, %p1954_p6 }
  0x61   : > { %1962 = shalt.err (!%p1959_p12)
}
  0x62   : > { %s1963_s20 = scalar_lea.vmem %s2291_s2, 1024  ;;  %s2093_s22 = smov [#allocation5]  }
  0x63   : > { %p1964_p13 = scmp.ne.s32.totalorder %s2291_s2, %s1963_s20  ;;  %s1968_s0 = sshll.u32 %s2093_s22, 4  ;;  %s1969_s0 = int_to_ptr.vmem [resolvable:$false] %s1968_s0 }
  0x64   : > { %s1970_s18 = scalar_lea.vmem %s1969_s0, 2048  ;;  %p1971_p10 = scmp.lt.s32.totalorder %s2291_s2, %s1969_s0 }
  0x65   : > { %p1966_p0 = pnand %p1964_p13, %p2262_p7  ;;  %p1972_p9 = scmp.lt.s32.totalorder %s1970_s18, %s1963_s20 }
  0x67   : > { %p1967_p5 = pneg %p1966_p0  ;;  %p1973_p1 = por %p1972_p9, %p1971_p10 }
  0x69   : > { %p1974_p4 = pnand %p1973_p1, %p1967_p5 }
  0x6b   : > { %1977 = shalt.err (!%p1974_p4)
}
  0x6c   : > { %1778 = dma.hbm_to_vmem [thread:$0]  (!%p2245_p2), %s2252_s17, 1024, %s2291_s2, %s289_s14, %s2540_s12, %s2540_s12, %s2539_s5  }
  0x6d   : > { %s1440_s26 = sshll.u32 %s2234_s13, 2  ;;  %s1441_s8 = sshll.u32 %s2086_s27, 6 }
  0x6e   : > { %s2324_s16 = scalar_lea.hbm %s2506_s4, %s1441_s8  ;;  %s313_s10 = scalar_lea.vmem [#allocation8], %s1440_s26 }
  0x6f   : > { %s320_s20 = sshll.u32 %s313_s10, 4  ;;  %s310_s22 = scalar_lea.sflag [#allocation9], %s288_s19  ;;  %s321_s20 = int_to_ptr.vmem [resolvable:$true] %s320_s20 }
  0x70   : > { %s1978_s0 = scalar_lea.hbm %s2324_s16, 64  ;;  %s1983_s5 = scalar_lea.hbm %s2506_s4, 512 }
  0x71   : > { %p1979_p6 = scmp.ne.s32.totalorder %s2324_s16, %s1978_s0  ;;  %p1984_p11 = scmp.lt.s32.totalorder %s2324_s16, %s2506_s4 }
  0x72   : > { %p1985_p12 = scmp.lt.s32.totalorder %s1983_s5, %s1978_s0 }
  0x73   : > { %p1981_p8 = pnand %p1979_p6, %p2262_p7 }
  0x74   : > { %p1986_p13 = por %p1985_p12, %p1984_p11 }
  0x75   : > { %p1982_p3 = pneg %p1981_p8 }
  0x77   : > { %p1987_p0 = pnand %p1986_p13, %p1982_p3 }
  0x79   : > { %1990 = shalt.err (!%p1987_p0)
}
  0x7a   : > { %s1991_s14 = scalar_lea.vmem %s321_s20, 64  ;;  %s2094_s19 = smov [#allocation8]  }
  0x7b   : > { %p1992_p5 = scmp.ne.s32.totalorder %s321_s20, %s1991_s14  ;;  %s1996_s18 = sshll.u32 %s2094_s19, 4  ;;  %s1997_s18 = int_to_ptr.vmem [resolvable:$false] %s1996_s18 }
  0x7c   : > { %s1998_s26 = scalar_lea.vmem %s1997_s18, 128  ;;  %p1999_p1 = scmp.lt.s32.totalorder %s321_s20, %s1997_s18 }
  0x7d   : > { %p1994_p10 = pnand %p1992_p5, %p2262_p7  ;;  %p2000_p4 = scmp.lt.s32.totalorder %s1998_s26, %s1991_s14 }
  0x7f   : > { %p1995_p9 = pneg %p1994_p10  ;;  %p2001_p6 = por %p2000_p4, %p1999_p1 }
  0x81   : > { %p2002_p8 = pnand %p2001_p6, %p1995_p9 }
  0x83   : > { %2005 = shalt.err (!%p2002_p8)
}
  0x84   : > { %1781 = dma.hbm_to_vmem [thread:$0]  (!%p2245_p2), %s2324_s16, 64, %s321_s20, %s310_s22  }
  0x85   : > { %p2543_p3 = scmp.ne.s32.totalorder %s2529_s9, 0 }
  0x86   : > { %s2347_s21 = sand.u32 (!%p2543_p3), 1, %s2078_s25   ;;  %p2544_p7 = scmp.ne.s32.totalorder (!%p2543_p3), %s2526_s30, 0 }
  0x87   : > { %329 = sbr.rel (%p2543_p3) target bundleno = 1564 (0x61c), region = 48  ;;  %s1443_s8 = sshll.u32 (!%p2543_p3), %s2347_s21, 6 }
  0x88   : > { %s332_s23 = scalar_lea.sflag (!%p2543_p3), [#allocation3], %s2347_s21  ;;  %s2351_s15 = scalar_lea.vmem (!%p2543_p3), [#allocation2], %s1443_s8 }
  0x8c   : > { %2049 = dma.done.wait (%p2544_p7), %s332_s23, 1024  }
  0x8d   : > { %2051 = vsyncadd (%p2544_p7), %s332_s23, 4294966272  ;;  %s340_s29 = sand.u32 1, %s2159_s28   ;;  %s2358_s16 = scalar_lea.vmem [#allocation5], %s1443_s8 }
  0x8e   : > { %s341_s9 = scalar_lea.sflag [#allocation6], %s340_s29 }
  0x8f   : > { %2053 = dma.done.wait (%p2544_p7), %s341_s9, 1024  }
  0x90   : > { %2055 = vsyncadd (%p2544_p7), %s341_s9, 4294966272  ;;  %p2545_p2 = scmp.eq.s32.totalorder %s2159_s28, 0 }
  0x92   : > { %2057 = dma.done.wait (%p2545_p2), [#allocation6], 2048   ;;  %p2546_p11 = pmov %p2545_p2 }
  0x93   : > { %s1446_s10 = sshll.u32 %s2347_s21, 2  ;;  %s354_s20 = scalar_lea.sflag [#allocation9], %s340_s29 }
  0x94   : > { %2059 = vsyncadd (%p2546_p11), [#allocation6], 4294965248  ;;  %s2369_s22 = scalar_lea.vmem [#allocation8], %s1446_s10 }
  0x95   : > { %2061 = dma.done.wait (%p2544_p7), %s354_s20, 64  }
  0x96   : > { %2063 = vsyncadd (%p2544_p7), %s354_s20, 4294967232  ;;  %p2547_p12 = pmov %p2545_p2 }
  0x97   : > { %p2548_p13 = pmov %p2545_p2 }
  0x98   : > { %2065 = dma.done.wait (%p2547_p12), [#allocation9], 1024  }
  0x99   : > { %2067 = vsyncadd (%p2548_p13), [#allocation9], 4294966272  ;;  %v1830_v0 = vld [vmem:[#allocation7 + $0x38] sm:$0xff]   ;;  %v1831_v1 = vld [vmem:[#allocation7 + $0x30] sm:$0xff]   ;;  %vm2096_vm0 = vmmov 0   ;;  %s1448_s5 = sshll.u32 %s2347_s21, 3 }
  0x9a   : > { %1581 = vmatprep.subr.bf16.mxu0 %v1830_v0  ;;  %v1832_v2 = vld [vmem:[#allocation7 + $0x28] sm:$0xff]   ;;  %v1833_v3 = vld [vmem:[#allocation7 + $0x20] sm:$0xff]   ;;  %v1834_v5 = vld [vmem:[#allocation7 + $0x18] sm:$0xff]   ;;  %s1494_s14 = sshll.u32 %s2159_s28, 7  ;;  %s401_s19 = scalar_lea.vmem [#allocation11], %s1448_s5 }
  0x9b   : > { %1582 = vmatpush3.bf16.msra.mxu0 %v1830_v0  ;;  %v1838_v4 = vld [vmem:[%s2358_s16] sm:$0xff]   ;;  %v1835_v6 = vld [vmem:[#allocation7 + $0x10] sm:$0xff]   ;;  %v1836_v7 = vld [vmem:[#allocation7 + $0x8] sm:$0xff]   ;;  %s1295_s18 = sshll.u32 %s401_s19, 4  ;;  %s2460_s23 = scalar_lea.hbm %s2509_s7, %s1494_s14  ;;  %s2462_s18 = int_to_ptr.vmem [resolvable:$true] %s1295_s18 }
  0x9c   : > { %1583 = vmatprep.subr.bf16.mxu0 %v1831_v1  ;;  %1597 = vmatprep.mubr.bf16.mxu0 %v1838_v4  ;;  %v1837_v8 = vld [vmem:[#allocation7] sm:$0xff]   ;;  %v1839_v9 = vld [vmem:[%s2358_s16 + $0x8] sm:$0xff]   ;;  %v1840_v10 = vld [vmem:[%s2358_s16 + $0x10] sm:$0xff]   ;;  %s2006_s29 = scalar_lea.vmem %s2462_s18, 128  ;;  %p2549_p5 = scmp.ne.s32.totalorder %s2534_s11, 0 }
  0x9d   : > { %v1841_v11 = vld [vmem:[%s2358_s16 + $0x18] sm:$0xff]   ;;  %v1842_v12 = vld [vmem:[%s2358_s16 + $0x20] sm:$0xff]   ;;  %v1843_v13 = vld [vmem:[%s2358_s16 + $0x28] sm:$0xff]   ;;  %p2007_p0 = scmp.ne.s32.totalorder %s2462_s18, %s2006_s29  ;;  %s2097_s28 = smov [#allocation11]  }
  0x9e   : > { %v1844_v14 = vld [vmem:[%s2358_s16 + $0x30] sm:$0xff]   ;;  %v1845_v15 = vld [vmem:[%s2358_s16 + $0x38] sm:$0xff]   ;;  %v2388_v16 = vld [vmem:[%s2351_s15] sm:$0xff]   ;;  %s2010_s9 = sshll.u32 %s2097_s28, 4  ;;  %s2011_s9 = int_to_ptr.vmem [resolvable:$false] %s2010_s9 }
  0x9f   : > { %1584 = vmatpush3.bf16.msra.mxu0 %v1831_v1  ;;  %1629 = vmatprep.mubr.bf16.mxu1 %v2388_v16  ;;  %v1854_v17 = vld [vmem:[#allocation7 + $0x78] sm:$0xff]   ;;  %v1855_v18 = vld [vmem:[#allocation7 + $0x70] sm:$0xff]   ;;  %v1856_v19 = vld [vmem:[#allocation7 + $0x68] sm:$0xff]   ;;  %p2008_p10 = pnand %p2007_p0, %p2549_p5  ;;  %s2012_s16 = scalar_lea.vmem %s2011_s9, 256 }
  0xa0   : > { %1585 = vmatprep.subr.bf16.mxu0 %v1832_v2  ;;  %v1857_v20 = vld [vmem:[#allocation7 + $0x60] sm:$0xff]   ;;  %v1858_v21 = vld [vmem:[#allocation7 + $0x58] sm:$0xff]   ;;  %v2392_v46 = vld [vmem:[%s2351_s15 + $0x8] sm:$0xff]   ;;  %p2013_p1 = scmp.lt.s32.totalorder %s2462_s18, %s2011_s9  ;;  %p2014_p4 = scmp.lt.s32.totalorder %s2012_s16, %s2006_s29 }
  0xa1   : > { %v2395_v47 = vld [vmem:[%s2351_s15 + $0x10] sm:$0xff]   ;;  %v2400_v48 = vld [vmem:[%s2351_s15 + $0x18] sm:$0xff]   ;;  %v2403_v49 = vld [vmem:[%s2351_s15 + $0x20] sm:$0xff]   ;;  %p2009_p9 = pneg %p2008_p10 }
  0xa2   : > { %v2408_v50 = vld [vmem:[%s2351_s15 + $0x28] sm:$0xff]   ;;  %v2411_v51 = vld [vmem:[%s2351_s15 + $0x30] sm:$0xff]   ;;  %v2416_v52 = vld [vmem:[%s2351_s15 + $0x38] sm:$0xff]   ;;  %s1282_s15 = scalar_lea.sflag [#allocation4], %s2347_s21  ;;  %p2015_p6 = por %p2014_p4, %p2013_p1 }
  0xa3   : > { %1586 = vmatpush3.bf16.msra.mxu0 %v1832_v2  ;;  %v1859_v53 = vld [vmem:[#allocation7 + $0x50] sm:$0xff]   ;;  %v1860_v54 = vld [vmem:[#allocation7 + $0x48] sm:$0xff]   ;;  %v1861_v55 = vld [vmem:[#allocation7 + $0x40] sm:$0xff]  }
  0xa4   : > { %1587 = vmatprep.subr.bf16.mxu0 %v1833_v3  ;;  %v1465_v58 = vld [vmem:[%s2505_s3] ss:$0 sm:$0xff]  ;;  %p2016_p8 = pnand %p2015_p6, %p2009_p9 }
  0xa7   : > { %1588 = vmatpush3.bf16.msra.mxu0 %v1833_v3 }
  0xa8   : > { %1589 = vmatprep.subr.bf16.mxu0 %v1834_v5 }
  0xab   : > { %1590 = vmatpush3.bf16.msra.mxu0 %v1834_v5 }
  0xac   : > { %1591 = vmatprep.subr.bf16.mxu0 %v1835_v6 }
  0xaf   : > { %1592 = vmatpush3.bf16.msra.mxu0 %v1835_v6 }
  0xb0   : > { %1593 = vmatprep.subr.bf16.mxu0 %v1836_v7 }
  0xb3   : > { %1594 = vmatpush3.bf16.msra.mxu0 %v1836_v7 }
  0xb4   : > { %1595 = vmatprep.subr.bf16.mxu0 %v1837_v8 }
  0xb7   : > { %1596 = vmatpush3.bf16.msra.mxu0 %v1837_v8 }
  0xb8   : > { %1645 = vmatprep.subr.bf16.mxu0 %v1854_v17 }
  0xba   : > { %1598 = vmatmul.mubr.bf16.vlgmr.msra.gmra.mxu0 %v1839_v9 }
  0xbb   : > { %1601 = vmatprep.mubr.bf16.mxu0 %v1840_v10  ;;  %1646 = vmatpush3.bf16.msra.mxu0 %v1854_v17 }
  0xbc   : > { %1647 = vmatprep.subr.bf16.mxu0 %v1855_v18 }
  0xbf   : > { %1648 = vmatpush3.bf16.msra.mxu0 %v1855_v18 }
  0xc0   : > { %1649 = vmatprep.subr.bf16.mxu0 %v1856_v19 }
  0xc2   : > { %1602 = vmatmul.mubr.bf16.gmra.mxu0 %v1841_v11 }
  0xc3   : > { %1605 = vmatprep.mubr.bf16.mxu0 %v1842_v12  ;;  %1650 = vmatpush3.bf16.msra.mxu0 %v1856_v19 }
  0xc4   : > { %1651 = vmatprep.subr.bf16.mxu0 %v1857_v20 }
  0xc7   : > { %1652 = vmatpush3.bf16.msra.mxu0 %v1857_v20 }
  0xc8   : > { %1653 = vmatprep.subr.bf16.mxu0 %v1858_v21 }
  0xca   : > { %1606 = vmatmul.mubr.bf16.gmra.mxu0 %v1843_v13 }
  0xcb   : > { %1609 = vmatprep.mubr.bf16.mxu0 %v1844_v14  ;;  %1654 = vmatpush3.bf16.msra.mxu0 %v1858_v21 }
  0xcc   : > { %1655 = vmatprep.subr.bf16.mxu0 %v1859_v53 }
  0xcf   : > { %1656 = vmatpush3.bf16.msra.mxu0 %v1859_v53 }
  0xd0   : > { %1657 = vmatprep.subr.bf16.mxu0 %v1860_v54 }
  0xd2   : > { %1610 = vmatmul.mubr.bf16.gmra.mxu0 %v1845_v15 }
  0xd3   : > { %1658 = vmatpush3.bf16.msra.mxu0 %v1860_v54 }
  0xd4   : > { %1659 = vmatprep.subr.bf16.mxu0 %v1861_v55 }
  0xd7   : > { %1660 = vmatpush3.bf16.msra.mxu0 %v1861_v55 }
 0x17a   : > { %v1599_v22 = vpop.f32.mrf.mxu0 }
 0x17c   : > { %v581_v23 = vpop.f32.mrf.mxu0 }
 0x17e   : > { %v1600_v24 = vpop.f32.mrf.mxu0 }
 0x17f   : > { %v645_v44 = vpack.c.bf16 %v1600_v24, %v1599_v22 }
 0x180   : > { %v584_v25 = vpop.f32.mrf.mxu0 }
 0x181   : > { %v644_v45 = vpack.c.bf16 %v584_v25, %v581_v23 }
 0x182   : > { %v1603_v26 = vpop.f32.mrf.mxu0 }
 0x184   : > { %v597_v27 = vpop.f32.mrf.mxu0 }
 0x186   : > { %v1604_v28 = vpop.f32.mrf.mxu0 }
 0x187   : > { %v647_v42 = vpack.c.bf16 %v1604_v28, %v1603_v26 }
 0x188   : > { %v600_v29 = vpop.f32.mrf.mxu0 }
 0x189   : > { %v646_v43 = vpack.c.bf16 %v600_v29, %v597_v27 }
 0x18a   : > { %v1607_v30 = vpop.f32.mrf.mxu0 }
 0x18c   : > { %v613_v31 = vpop.f32.mrf.mxu0 }
 0x18e   : > { %v1608_v32 = vpop.f32.mrf.mxu0 }
 0x18f   : > { %v649_v40 = vpack.c.bf16 %v1608_v32, %v1607_v30 }
 0x190   : > { %v616_v33 = vpop.f32.mrf.mxu0 }
 0x191   : > { %v648_v41 = vpack.c.bf16 %v616_v33, %v613_v31 }
 0x192   : > { %v1611_v34 = vpop.f32.mrf.mxu0 }
 0x194   : > { %v629_v35 = vpop.f32.mrf.mxu0 }
 0x196   : > { %v1612_v36 = vpop.f32.mrf.mxu0 }
 0x197   : > { %v651_v37 = vpack.c.bf16 %v1612_v36, %v1611_v34 }
 0x198   : > { %v632_v38 = vpop.f32.mrf.mxu0 }
 0x199   : > { %v650_v39 = vpack.c.bf16 %v632_v38, %v629_v35  ;;  %1613 = vmatprep.subr.bf16.mxu1 %v651_v37 }
 0x19a   : > { %1614 = vmatpush3.bf16.msra.mxu1 %v651_v37 }
 0x19b   : > { %1615 = vmatprep.subr.bf16.mxu1 %v650_v39 }
 0x19e   : > { %1616 = vmatpush3.bf16.msra.mxu1 %v650_v39 }
 0x19f   : > { %1617 = vmatprep.subr.bf16.mxu1 %v649_v40 }
 0x1a2   : > { %1618 = vmatpush3.bf16.msra.mxu1 %v649_v40 }
 0x1a3   : > { %1619 = vmatprep.subr.bf16.mxu1 %v648_v41 }
 0x1a6   : > { %1620 = vmatpush3.bf16.msra.mxu1 %v648_v41 }
 0x1a7   : > { %1621 = vmatprep.subr.bf16.mxu1 %v647_v42 }
 0x1aa   : > { %1622 = vmatpush3.bf16.msra.mxu1 %v647_v42 }
 0x1ab   : > { %1623 = vmatprep.subr.bf16.mxu1 %v646_v43 }
 0x1ae   : > { %1624 = vmatpush3.bf16.msra.mxu1 %v646_v43 }
 0x1af   : > { %1625 = vmatprep.subr.bf16.mxu1 %v645_v44 }
 0x1b2   : > { %1626 = vmatpush3.bf16.msra.mxu1 %v645_v44 }
 0x1b3   : > { %1627 = vmatprep.subr.bf16.mxu1 %v644_v45 }
 0x1b6   : > { %1628 = vmatpush3.bf16.msra.mxu1 %v644_v45 }
 0x1b9   : > { %1630 = vmatmul.mubr.bf16.vlgmr.msra.gmra.mxu1 %v2392_v46 }
 0x1ba   : > { %1633 = vmatprep.mubr.bf16.mxu1 %v2395_v47 }
 0x1c1   : > { %1634 = vmatmul.mubr.bf16.gmra.mxu1 %v2400_v48 }
 0x1c2   : > { %1637 = vmatprep.mubr.bf16.mxu1 %v2403_v49 }
 0x1c9   : > { %1638 = vmatmul.mubr.bf16.gmra.mxu1 %v2408_v50 }
 0x1ca   : > { %1641 = vmatprep.mubr.bf16.mxu1 %v2411_v51 }
 0x1d1   : > { %1642 = vmatmul.mubr.bf16.gmra.mxu1 %v2416_v52 }
 0x1d2   : > { %1693 = vmatprep.mubr.bf16.mxu1 %v2388_v16 }
 0x279   : > { %v1631_v56 = vpop.f32.mrf.mxu1 }
 0x27a   : > { %v750_v62 = vadd.f32 %v1631_v56, %v1465_v58 }
 0x27b   : > { %v741_v57 = vpop.f32.mrf.mxu1 }
 0x27c   : > { %v742_v60 = vadd.f32 %v1465_v58, %v741_v57  ;;  %v806_v5 = vmax.f32 %v750_v62, 0.0 }
 0x27d   : > { %v1632_v59 = vpop.f32.mrf.mxu1 }
 0x27e   : > { %v753_v61 = vadd.f32 %v1632_v59, %v1465_v58  ;;  %v804_v3 = vmax.f32 %v742_v60, 0.0 }
 0x27f   : > { %v744_v63 = vpop.f32.mrf.mxu1 }
 0x280   : > { %v745_v0 = vadd.f32 %v1465_v58, %v744_v63  ;;  %v807_v1 = vmax.f32 %v753_v61, 0.0 }
 0x281   : > { %v1635_v2 = vpop.f32.mrf.mxu1 }
 0x282   : > { %v805_v4 = vmax.f32 %v745_v0, 0.0  ;;  %v821_v8 = vpack.c.bf16 %v807_v1, %v806_v5  ;;  %v766_v12 = vadd.f32 %v1635_v2, %v1465_v58 }
 0x283   : > { %v757_v6 = vpop.f32.mrf.mxu1 }
 0x284   : > { %v820_v7 = vpack.c.bf16 %v805_v4, %v804_v3  ;;  %v758_v10 = vadd.f32 %v1465_v58, %v757_v6  ;;  %v810_v19 = vmax.f32 %v766_v12, 0.0 }
 0x285   : > { %v1636_v9 = vpop.f32.mrf.mxu1 }
 0x286   : > { %v769_v11 = vadd.f32 %v1636_v9, %v1465_v58  ;;  %1661 = vmatprep.mubr.bf16.mxu0 %v820_v7  ;;  %v808_v17 = vmax.f32 %v758_v10, 0.0 }
 0x287   : > { %v760_v13 = vpop.f32.mrf.mxu1  ;;  %1662 = vmatmul.mubr.bf16.vlgmr.msra.gmra.mxu0 %v821_v8 }
 0x288   : > { %v761_v14 = vadd.f32 %v1465_v58, %v760_v13  ;;  %v811_v15 = vmax.f32 %v769_v11, 0.0 }
 0x289   : > { %v1639_v16 = vpop.f32.mrf.mxu1 }
 0x28a   : > { %v809_v18 = vmax.f32 %v761_v14, 0.0  ;;  %v823_v22 = vpack.c.bf16 %v811_v15, %v810_v19  ;;  %v782_v26 = vadd.f32 %v1639_v16, %v1465_v58  ;;  %v2095_v16 = vmov 0.0  }
 0x28b   : > { %v773_v20 = vpop.f32.mrf.mxu1  ;;  %1709 = vmatprep.subr.bf16.mxu0 %v2095_v16 }
 0x28c   : > { %v822_v21 = vpack.c.bf16 %v809_v18, %v808_v17  ;;  %v774_v24 = vadd.f32 %v1465_v58, %v773_v20  ;;  %v814_v33 = vmax.f32 %v782_v26, 0.0 }
 0x28d   : > { %v1640_v23 = vpop.f32.mrf.mxu1 }
 0x28e   : > { %v785_v25 = vadd.f32 %v1640_v23, %v1465_v58  ;;  %1665 = vmatprep.mubr.bf16.mxu0 %v822_v21  ;;  %v812_v31 = vmax.f32 %v774_v24, 0.0 }
 0x28f   : > { %v776_v27 = vpop.f32.mrf.mxu1  ;;  %1666 = vmatmul.mubr.bf16.gmra.mxu0 %v823_v22 }
 0x290   : > { %v777_v28 = vadd.f32 %v1465_v58, %v776_v27  ;;  %v815_v29 = vmax.f32 %v785_v25, 0.0 }
 0x291   : > { %v1643_v30 = vpop.f32.mrf.mxu1 }
 0x292   : > { %v813_v32 = vmax.f32 %v777_v28, 0.0  ;;  %v825_v36 = vpack.c.bf16 %v815_v29, %v814_v33  ;;  %v798_v40 = vadd.f32 %v1643_v30, %v1465_v58  ;;  %v1483_v30 = vld [vmem:[%s2505_s3 + $0x1] ss:$0 sm:$0xff] }
 0x293   : > { %v789_v34 = vpop.f32.mrf.mxu1 }
 0x294   : > { %v824_v35 = vpack.c.bf16 %v813_v32, %v812_v31  ;;  %v790_v38 = vadd.f32 %v1465_v58, %v789_v34  ;;  %v818_v53 = vmax.f32 %v798_v40, 0.0 }
 0x295   : > { %v1644_v37 = vpop.f32.mrf.mxu1 }
 0x296   : > { %v801_v39 = vadd.f32 %v1644_v37, %v1465_v58  ;;  %1669 = vmatprep.mubr.bf16.mxu0 %v824_v35  ;;  %v816_v44 = vmax.f32 %v790_v38, 0.0 }
 0x297   : > { %v792_v41 = vpop.f32.mrf.mxu1  ;;  %1670 = vmatmul.mubr.bf16.gmra.mxu0 %v825_v36 }
 0x298   : > { %v793_v42 = vadd.f32 %v1465_v58, %v792_v41  ;;  %v819_v43 = vmax.f32 %v801_v39, 0.0 }
 0x29a   : > { %v817_v45 = vmax.f32 %v793_v42, 0.0  ;;  %v827_v55 = vpack.c.bf16 %v819_v43, %v818_v53 }
 0x29c   : > { %v826_v54 = vpack.c.bf16 %v817_v45, %v816_v44 }
 0x29e   : > { %1673 = vmatprep.mubr.bf16.mxu0 %v826_v54 }
 0x29f   : > { %1674 = vmatmul.mubr.bf16.gmra.mxu0 %v827_v55 }
 0x2a0   : > { %1725 = vmatprep.mubr.msk.bf16.mxu0 %vm2096_vm0, %v2095_v16 }
 0x347   : > { %v1663_v56 = vpop.f32.mrf.mxu0 }
 0x349   : > { %v927_v57 = vpop.f32.mrf.mxu0 }
 0x34b   : > { %v1664_v59 = vpop.f32.mrf.mxu0 }
 0x34c   : > { %v991_v14 = vpack.c.bf16 %v1664_v59, %v1663_v56 }
 0x34d   : > { %v930_v60 = vpop.f32.mrf.mxu0 }
 0x34e   : > { %v990_v15 = vpack.c.bf16 %v930_v60, %v927_v57 }
 0x34f   : > { %v1667_v61 = vpop.f32.mrf.mxu0 }
 0x351   : > { %v943_v62 = vpop.f32.mrf.mxu0 }
 0x353   : > { %v1668_v63 = vpop.f32.mrf.mxu0 }
 0x354   : > { %v993_v12 = vpack.c.bf16 %v1668_v63, %v1667_v61 }
 0x355   : > { %v946_v0 = vpop.f32.mrf.mxu0 }
 0x356   : > { %v992_v13 = vpack.c.bf16 %v946_v0, %v943_v62 }
 0x357   : > { %v1671_v1 = vpop.f32.mrf.mxu0 }
 0x359   : > { %v959_v2 = vpop.f32.mrf.mxu0 }
 0x35b   : > { %v1672_v3 = vpop.f32.mrf.mxu0 }
 0x35c   : > { %v995_v10 = vpack.c.bf16 %v1672_v3, %v1671_v1 }
 0x35d   : > { %v962_v58 = vpop.f32.mrf.mxu0 }
 0x35e   : > { %v994_v11 = vpack.c.bf16 %v962_v58, %v959_v2 }
 0x35f   : > { %v1675_v4 = vpop.f32.mrf.mxu0 }
 0x361   : > { %v975_v5 = vpop.f32.mrf.mxu0 }
 0x363   : > { %v1676_v6 = vpop.f32.mrf.mxu0 }
 0x364   : > { %v997_v7 = vpack.c.bf16 %v1676_v6, %v1675_v4 }
 0x365   : > { %v978_v8 = vpop.f32.mrf.mxu0 }
 0x366   : > { %v996_v9 = vpack.c.bf16 %v978_v8, %v975_v5  ;;  %1677 = vmatprep.subr.bf16.mxu1 %v997_v7 }
 0x367   : > { %1678 = vmatpush3.bf16.msra.mxu1 %v997_v7 }
 0x368   : > { %1679 = vmatprep.subr.bf16.mxu1 %v996_v9 }
 0x36b   : > { %1680 = vmatpush3.bf16.msra.mxu1 %v996_v9 }
 0x36c   : > { %1681 = vmatprep.subr.bf16.mxu1 %v995_v10 }
 0x36f   : > { %1682 = vmatpush3.bf16.msra.mxu1 %v995_v10 }
 0x370   : > { %1683 = vmatprep.subr.bf16.mxu1 %v994_v11 }
 0x373   : > { %1684 = vmatpush3.bf16.msra.mxu1 %v994_v11 }
 0x374   : > { %1685 = vmatprep.subr.bf16.mxu1 %v993_v12 }
 0x377   : > { %1686 = vmatpush3.bf16.msra.mxu1 %v993_v12 }
 0x378   : > { %1687 = vmatprep.subr.bf16.mxu1 %v992_v13 }
 0x37b   : > { %1688 = vmatpush3.bf16.msra.mxu1 %v992_v13 }
 0x37c   : > { %1689 = vmatprep.subr.bf16.mxu1 %v991_v14 }
 0x37f   : > { %1690 = vmatpush3.bf16.msra.mxu1 %v991_v14 }
 0x380   : > { %1691 = vmatprep.subr.bf16.mxu1 %v990_v15 }
 0x383   : > { %1692 = vmatpush3.bf16.msra.mxu1 %v990_v15 }
 0x384   : > { %1729 = vmatprep.subr.bf16.mxu1 %v2095_v16 }
 0x386   : > { %1694 = vmatmul.mubr.bf16.vlgmr.msra.gmra.mxu1 %v2392_v46  ;;  %v1862_v46 = vld [vmem:[#allocation10 + $0x38] sm:$0xff]  }
 0x387   : > { %1697 = vmatprep.mubr.bf16.mxu1 %v2395_v47  ;;  %1730 = vmatpush3.bf16.msra.mxu1 %v1862_v46  ;;  %v1863_v47 = vld [vmem:[#allocation10 + $0x30] sm:$0xff]  }
 0x388   : > { %1731 = vmatprep.subr.bf16.mxu1 %v2095_v16 }
 0x38b   : > { %1732 = vmatpush3.bf16.msra.mxu1 %v1863_v47  ;;  %v1127_v47 = vld [vmem:[%s2369_s22] sm:$0xf] }
 0x38c   : > { %1733 = vmatprep.subr.bf16.mxu1 %v2095_v16 }
 0x38e   : > { %1698 = vmatmul.mubr.bf16.gmra.mxu1 %v2400_v48  ;;  %v1864_v48 = vld [vmem:[#allocation10 + $0x28] sm:$0xff]  }
 0x38f   : > { %1701 = vmatprep.mubr.bf16.mxu1 %v2403_v49  ;;  %1734 = vmatpush3.bf16.msra.mxu1 %v1864_v48  ;;  %v1865_v49 = vld [vmem:[#allocation10 + $0x20] sm:$0xff]  }
 0x390   : > { %1735 = vmatprep.subr.bf16.mxu1 %v2095_v16  ;;  %v1869_v48 = vld [vmem:[#allocation10] sm:$0xff]  }
 0x393   : > { %1736 = vmatpush3.bf16.msra.mxu1 %v1865_v49 }
 0x394   : > { %1737 = vmatprep.subr.bf16.mxu1 %v2095_v16 }
 0x396   : > { %1702 = vmatmul.mubr.bf16.gmra.mxu1 %v2408_v50  ;;  %v1866_v50 = vld [vmem:[#allocation10 + $0x18] sm:$0xff]  }
 0x397   : > { %1705 = vmatprep.mubr.bf16.mxu1 %v2411_v51  ;;  %1738 = vmatpush3.bf16.msra.mxu1 %v1866_v50  ;;  %v1867_v51 = vld [vmem:[#allocation10 + $0x10] sm:$0xff]  }
 0x398   : > { %1739 = vmatprep.subr.bf16.mxu1 %v2095_v16 }
 0x39b   : > { %1740 = vmatpush3.bf16.msra.mxu1 %v1867_v51 }
 0x39c   : > { %1741 = vmatprep.subr.bf16.mxu1 %v2095_v16 }
 0x39e   : > { %1706 = vmatmul.mubr.bf16.gmra.mxu1 %v2416_v52  ;;  %v1868_v52 = vld [vmem:[#allocation10 + $0x8] sm:$0xff]  }
 0x39f   : > { %1745 = vmatprep.mubr.msk.bf16.mxu1 %vm2096_vm0, %v2095_v16  ;;  %1742 = vmatpush3.bf16.msra.mxu1 %v1868_v52 }
 0x3a0   : > { %1743 = vmatprep.subr.bf16.mxu1 %v2095_v16 }
 0x3a3   : > { %1744 = vmatpush3.bf16.msra.mxu1 %v1869_v48 }
 0x446   : > { %v1695_v17 = vpop.f32.mrf.mxu1 }
 0x447   : > { %v1049_v6 = vadd.f32 %v1695_v17, %v1483_v30 }
 0x448   : > { %v1040_v18 = vpop.f32.mrf.mxu1 }
 0x449   : > { %v1105_v11 = vmax.f32 %v1049_v6, 0.0  ;;  %v1041_v12 = vadd.f32 %v1483_v30, %v1040_v18  ;;  %v1484_v18 = vld [vmem:[%s2508_s6] ss:$0 sm:$0xff] }
 0x44a   : > { %v1696_v19 = vpop.f32.mrf.mxu1 }
 0x44b   : > { %v1052_v58 = vadd.f32 %v1696_v19, %v1483_v30  ;;  %v1103_v15 = vmax.f32 %v1041_v12, 0.0 }
 0x44c   : > { %v1043_v20 = vpop.f32.mrf.mxu1 }
 0x44d   : > { %v1106_v8 = vmax.f32 %v1052_v58, 0.0  ;;  %v1044_v9 = vadd.f32 %v1483_v30, %v1043_v20 }
 0x44e   : > { %v1699_v21 = vpop.f32.mrf.mxu1 }
 0x44f   : > { %v1065_v61 = vadd.f32 %v1699_v21, %v1483_v30  ;;  %v1120_v13 = vpack.c.bf16 %v1106_v8, %v1105_v11  ;;  %v1104_v14 = vmax.f32 %v1044_v9, 0.0 }
 0x450   : > { %v1056_v22 = vpop.f32.mrf.mxu1 }
 0x451   : > { %v1109_v2 = vmax.f32 %v1065_v61, 0.0  ;;  %v1057_v3 = vadd.f32 %v1483_v30, %v1056_v22  ;;  %v1119_v46 = vpack.c.bf16 %v1104_v14, %v1103_v15 }
 0x452   : > { %v1700_v23 = vpop.f32.mrf.mxu1 }
 0x453   : > { %v1068_v57 = vadd.f32 %v1700_v23, %v1483_v30  ;;  %v1107_v7 = vmax.f32 %v1057_v3, 0.0 }
 0x454   : > { %v1059_v24 = vpop.f32.mrf.mxu1 }
 0x455   : > { %v1110_v63 = vmax.f32 %v1068_v57, 0.0  ;;  %v1060_v0 = vadd.f32 %v1483_v30, %v1059_v24 }
 0x456   : > { %v1703_v25 = vpop.f32.mrf.mxu1 }
 0x457   : > { %v1081_v43 = vadd.f32 %v1703_v25, %v1483_v30  ;;  %v1122_v4 = vpack.c.bf16 %v1110_v63, %v1109_v2  ;;  %v1108_v5 = vmax.f32 %v1060_v0, 0.0 }
 0x458   : > { %v1072_v26 = vpop.f32.mrf.mxu1 }
 0x459   : > { %v1113_v55 = vmax.f32 %v1081_v43, 0.0  ;;  %v1073_v56 = vadd.f32 %v1483_v30, %v1072_v26  ;;  %v1121_v10 = vpack.c.bf16 %v1108_v5, %v1107_v7 }
 0x45a   : > { %v1704_v27 = vpop.f32.mrf.mxu1 }
 0x45b   : > { %v1084_v40 = vadd.f32 %v1704_v27, %v1483_v30  ;;  %v1111_v62 = vmax.f32 %v1073_v56, 0.0 }
 0x45c   : > { %v1075_v28 = vpop.f32.mrf.mxu1 }
 0x45d   : > { %v1114_v45 = vmax.f32 %v1084_v40, 0.0  ;;  %v1076_v53 = vadd.f32 %v1483_v30, %v1075_v28 }
 0x45e   : > { %v1707_v29 = vpop.f32.mrf.mxu1 }
 0x45f   : > { %v1097_v32 = vadd.f32 %v1707_v29, %v1483_v30  ;;  %v1124_v59 = vpack.c.bf16 %v1114_v45, %v1113_v55  ;;  %v1112_v60 = vmax.f32 %v1076_v53, 0.0 }
 0x460   : > { %v1088_v31 = vpop.f32.mrf.mxu1 }
 0x461   : > { %v1117_v36 = vmax.f32 %v1097_v32, 0.0  ;;  %v1089_v37 = vadd.f32 %v1483_v30, %v1088_v31  ;;  %v1123_v1 = vpack.c.bf16 %v1112_v60, %v1111_v62 }
 0x462   : > { %v1708_v33 = vpop.f32.mrf.mxu1 }
 0x463   : > { %v1100_v34 = vadd.f32 %v1708_v33, %v1483_v30  ;;  %v1115_v44 = vmax.f32 %v1089_v37, 0.0 }
 0x464   : > { %v1091_v35 = vpop.f32.mrf.mxu1 }
 0x465   : > { %v1118_v38 = vmax.f32 %v1100_v34, 0.0  ;;  %v1092_v39 = vadd.f32 %v1483_v30, %v1091_v35 }
 0x467   : > { %v1126_v41 = vpack.c.bf16 %v1118_v38, %v1117_v36  ;;  %v1116_v42 = vmax.f32 %v1092_v39, 0.0 }
 0x469   : > { %1710 = vmatpush3.bf16.msra.mxu0 %v1126_v41  ;;  %v1125_v54 = vpack.c.bf16 %v1116_v42, %v1115_v44 }
 0x46a   : > { %1711 = vmatprep.subr.bf16.mxu0 %v2095_v16 }
 0x46d   : > { %1712 = vmatpush3.bf16.msra.mxu0 %v1125_v54 }
 0x46e   : > { %1713 = vmatprep.subr.bf16.mxu0 %v2095_v16 }
 0x471   : > { %1714 = vmatpush3.bf16.msra.mxu0 %v1124_v59 }
 0x472   : > { %1715 = vmatprep.subr.bf16.mxu0 %v2095_v16 }
 0x475   : > { %1716 = vmatpush3.bf16.msra.mxu0 %v1123_v1 }
 0x476   : > { %1717 = vmatprep.subr.bf16.mxu0 %v2095_v16 }
 0x479   : > { %1718 = vmatpush3.bf16.msra.mxu0 %v1122_v4 }
 0x47a   : > { %1719 = vmatprep.subr.bf16.mxu0 %v2095_v16 }
 0x47d   : > { %1720 = vmatpush3.bf16.msra.mxu0 %v1121_v10 }
 0x47e   : > { %1721 = vmatprep.subr.bf16.mxu0 %v2095_v16 }
 0x481   : > { %1722 = vmatpush3.bf16.msra.mxu0 %v1120_v13 }
 0x482   : > { %1723 = vmatprep.subr.bf16.mxu0 %v2095_v16 }
 0x485   : > { %1724 = vmatpush3.bf16.msra.mxu0 %v1119_v46 }
 0x488   : > { %1726 = vmatmul.mubr.bf16.vlgmr.msra.gmra.mxu0 %v1127_v47 }
 0x548   : > { %v1162_v49 = vpop.f32.mrf.mxu0 }
 0x549   : > { %v1168_v50 = vpack.c.bf16 %v1162_v49, %v1162_v49 }
 0x54a   : > { %v1727_v51 = vpop.f32.mrf.mxu0 }
 0x54b   : > { %1746 = vmatmul.mubr.bf16.vlgmr.msra.gmra.mxu1 %v1168_v50 }
 0x54c   : > { %v1165_v52 = vpop.f32.mrf.mxu0 }
 0x54e   : > { %v1728_v17 = vpop.f32.mrf.mxu0 }
 0x60b   : > { %v1274_v16 = vpop.f32.mrf.mxu1 }
 0x60c   : > { %v1275_v19 = vadd.f32 %v1484_v18, %v1274_v16 }
 0x60d   : > { %v1747_v20 = vpop.f32.mrf.mxu1 }
 0x60e   : > { %1280 = vst [vmem:[%s401_s19] sm:$0xff] %v1275_v19 }
 0x60f   : > { %v1277_v21 = vpop.f32.mrf.mxu1 }
 0x610   : > { %2019 = shalt.err (!%p2016_p8)
}
 0x611   : > { %s2020_s10 = scalar_lea.hbm %s2460_s23, 128  ;;  %s2024_s22 = scalar_lea.hbm %s2509_s7, 1024 }
 0x612   : > { %p2021_p3 = scmp.ne.s32.totalorder %s2460_s23, %s2020_s10  ;;  %p2025_p11 = scmp.lt.s32.totalorder %s2460_s23, %s2509_s7 }
 0x613   : > { %p2026_p12 = scmp.lt.s32.totalorder %s2024_s22, %s2020_s10 }
 0x614   : > { %p2022_p7 = pnand %p2021_p3, %p2549_p5 }
 0x615   : > { %p2027_p13 = por %p2026_p12, %p2025_p11 }
 0x616   : > { %p2023_p2 = pneg %p2022_p7 }
 0x618   : > { %p2028_p0 = pnand %p2027_p13, %p2023_p2 }
 0x61a   : > { %2031 = shalt.err (!%p2028_p0)
}
 0x61b   : > { %1763 = dma.vmem_to_hbm [thread:$0]  (%p2549_p5), %s2462_s18, 128, %s2460_s23, %s1282_s15   ;;  %v1748_v22 = vpop.f32.mrf.mxu1 }
 0x61c PF: > { %s2550_s17 = sld [smem:[#allocation19_spill]]  ;;  %p1791_p10 = scmp.ge.s32.totalorder %s2086_s27, 2 }
 0x61d   : > { %s1307_s13 = sand.u32 1, %s2074_s24  }
 0x61e   : > { %s1308_s5 = scalar_lea.sflag [#allocation4], %s1307_s13 }
 0x622   : > { %p2551_p9 = scmp.ne.s32.totalorder %s2550_s17, 0 }
 0x624   : > { %p1783_p1 = pnand %p1791_p10, %p2551_p9 }
 0x626   : > { %p1784_p4 = pneg %p1783_p1 }
 0x628   : > { %2069 = dma.done.wait (%p1784_p4), %s1308_s5, 128  }
 0x629   : > { %2071 = vsyncadd (%p1784_p4), %s1308_s5, 4294967168  ;;  %s2552_s27 = sld [smem:[#allocation20_spill]]  ;;  %s2555_s24 = smov %s2078_s25 }
 0x62a   : > { %s2553_s12 = sld [smem:[#allocation18_spill]] }
 0x62b   : > { %s2554_s26 = sld [smem:[#allocation21_spill]] }
 0x62f   : > { %p26_p6 = scmp.ge.s32.totalorder %s2552_s27, 10  }
 0x630   : > { %s2556_s25 = smov %s2553_s12 }
 0x631   :  { %28 = sbr.rel (!%p26_p6) target bundleno = 13 (0xd), region = 129 }
 0x636   :  { %1313 = vsyncpa [#allocation3], 1 }
 0x637   :  { %1315 = vsyncpa [#allocation3 + $0x1], 1 }
 0x638   :  { %1316 = vsyncpa [#allocation6], 1 }
 0x639   :  { %1318 = vsyncpa [#allocation6 + $0x1], 1 }
 0x63a   :  { %1319 = vsyncpa [#allocation9], 1 }
 0x63b   :  { %1321 = vsyncpa [#allocation9 + $0x1], 1 }
 0x63c   :  { %1322 = vsyncpa [#allocation4], 1 }
 0x63d   :  { %1324 = vsyncpa [#allocation4 + $0x1], 1 }

</bundles_post_ra>
